<compile_context>
chip_gen: v7x
topology: tpu7x:2x2x1
jax: 0.10.0
libtpu: 0.0.40
codegen_flags: <defaults>
</compile_context>

<pallas_src>
import functools

import jax
import jax.numpy as jnp
from jax.experimental import pallas as pl
from jax.experimental.pallas import tpu as pltpu

EMBEDDING_DIM = 256


class MediSimConfig:
    """Small synthetic config (shapes only matter through the sums below)."""
    diagnosis_vocab_size = 128
    procedure_vocab_size = 128
    medication_vocab_size = 128
    special_vocab_size = 8
    total_vocab_size = (diagnosis_vocab_size + procedure_vocab_size +
                        medication_vocab_size + special_vocab_size)


def _cascaded_rae_kernel(
    diag_vocab,              # static python int (bound via functools.partial)
    x_ref,                   # [TB, diag]  f32
    w1e, b1e, w1d, b1d,      # ae1: enc [diag,E] bf16 (pre-sliced), [1,E] f32;
                             #      dec [E,V]   bf16,               [1,V] f32
    w2e, b2e, w2d, b2d,      # ae2: enc [V,E] bf16, [1,E] f32; dec [E,V] bf16, [1,V] f32
    w3e, b3e, w3d, b3d,      # ae3
    o1_ref, o2_ref, o3_ref,  # [TB, V]       f32
    tail_ref,                # [TB, V-diag]  f32
):
    x = x_ref[...]

    def ae(h, we_ref, be_ref, wd_ref, bd_ref):
        # bf16 operands into the MXU, f32 accumulation; bias/ReLU stay f32.
        z = jnp.dot(h.astype(jnp.bfloat16), we_ref[...],
                    preferred_element_type=jnp.float32)
        z = jnp.maximum(z + be_ref[...], 0.0)
        y = jnp.dot(z.astype(jnp.bfloat16), wd_ref[...],
                    preferred_element_type=jnp.float32)
        return y + bd_ref[...]

    # First AE: the zero-padded columns of the masked input contribute nothing
    # to the encoder matmul, so feed only x (w1e already sliced to [diag, E]).
    y1 = ae(x, w1e, b1e, w1d, b1d)
    # Residual add of the masked input touches only the first `diag` columns.
    # diag is a multiple of 128, so both pieces are lane-aligned; the concat is
    # a trivial VMEM copy compared with the matmuls and lowers cleanly.
    o1 = jnp.concatenate([y1[:, :diag_vocab] + x, y1[:, diag_vocab:]], axis=-1)

    o2 = ae(o1, w2e, b2e, w2d, b2d) + o1
    o3 = ae(o2, w3e, b3e, w3d, b3d) + o2

    sig_o3 = jax.nn.sigmoid(o3)
    o1_ref[...] = jax.nn.sigmoid(o1)
    o2_ref[...] = jax.nn.sigmoid(o2)
    o3_ref[...] = sig_o3
    # 4th output emitted straight from VMEM (lane-aligned start = diag = 128),
    # avoiding an HBM re-read of o3 by a wrapper-side slice.
    tail_ref[...] = sig_o3[:, diag_vocab:]


def _round_up(n, m):
    return ((n + m - 1) // m) * m


def _pick_batch_tile(B, batch_tile):
    """Choose the batch tile.

    - Big batches: use `batch_tile` (multiple of 8, MXU-friendly).
    - Mid batches: split into >=2 grid steps so the "parallel" axis shards
      across both TensorCores on v7x (weights are resident, so the only cost
      is a second tiny grid step).
    - Tiny batches: one full-batch block.
    """
    if B > 2 * batch_tile:
        return batch_tile
    if B >= 256:
        half = pl.cdiv(B, 2)
        return _round_up(half, 256) if half >= 256 else _round_up(half, 128)
    return B


def cascaded_residual_autoencoder(x, params, config, *, batch_tile=512):
    """x: [B, diagnosis_vocab_size] float32. params: dict of 12 arrays."""
    B = x.shape[0]
    diag = config.diagnosis_vocab_size
    V = (config.diagnosis_vocab_size + config.procedure_vocab_size +
         config.medication_vocab_size)
    E = EMBEDDING_DIM
    assert V == config.total_vocab_size - config.special_vocab_size

    x = x.astype(jnp.float32)
    tb = _pick_batch_tile(B, batch_tile)
    grid = (pl.cdiv(B, tb),)

    # Weights -> bf16 once in the wrapper (halves HBM traffic and resident
    # VMEM, full bf16 MXU rate).  Biases stay f32 (VPU/EUP path stays f32).
    bf16 = jnp.bfloat16
    weights = [
        # Only the first `diag` rows of w1e ever see non-zero input columns.
        params["w1e"][:diag, :].astype(bf16), params["b1e"],
        params["w1d"].astype(bf16), params["b1d"],
        params["w2e"].astype(bf16), params["b2e"],
        params["w2d"].astype(bf16), params["b2d"],
        params["w3e"].astype(bf16), params["b3e"],
        params["w3d"].astype(bf16), params["b3d"],
    ]

    def const_spec(a):
        # Full-array block, same block index every grid step -> DMA'd once and
        # held resident in VMEM across all batch tiles.
        return pl.BlockSpec(a.shape, lambda i: (0,) * a.ndim)

    kernel = functools.partial(_cascaded_rae_kernel, diag)

    out_spec_v = pl.BlockSpec((tb, V), lambda i: (i, 0))
    out_spec_t = pl.BlockSpec((tb, V - diag), lambda i: (i, 0))

    # Advisory cost estimate so XLA can schedule neighbors around the call.
    weight_bytes = sum(int(w.size) * w.dtype.itemsize for w in weights)
    flops = (2 * B * E * (diag + V)          # ae1 (enc on diag cols only + dec)
             + 2 * 2 * B * E * (V + V))      # ae2, ae3
    cost = pl.CostEstimate(
        flops=flops,
        transcendentals=3 * B * V,
        bytes_accessed=(B * diag * 4 + weight_bytes
                        + B * (3 * V + (V - diag)) * 4),
    )

    o1, o2, o3, tail = pl.pallas_call(
        kernel,
        grid=grid,
        out_shape=(
            jax.ShapeDtypeStruct((B, V), jnp.float32),
            jax.ShapeDtypeStruct((B, V), jnp.float32),
            jax.ShapeDtypeStruct((B, V), jnp.float32),
            jax.ShapeDtypeStruct((B, V - diag), jnp.float32),
        ),
        in_specs=[pl.BlockSpec((tb, diag), lambda i: (i, 0))] +
                 [const_spec(w) for w in weights],
        out_specs=(out_spec_v, out_spec_v, out_spec_v, out_spec_t),
        compiler_params=pltpu.CompilerParams(
            dimension_semantics=("parallel",),
            vmem_limit_bytes=32 << 20,
        ),
        cost_estimate=cost,
    )(x, *weights)

    return (o1, o2, o3), tail


def init_params(key, config):
    """Deterministic init mimicking nn.Linear (uniform +-1/sqrt(fan_in))."""
    V = (config.diagnosis_vocab_size + config.procedure_vocab_size +
         config.medication_vocab_size)
    E = EMBEDDING_DIM
    params = {}
    keys = jax.random.split(key, 12)
    ki = iter(keys)
    for ae_idx in (1, 2, 3):
        lim_e = 1.0 / jnp.sqrt(V)
        lim_d = 1.0 / jnp.sqrt(E)
        params[f"w{ae_idx}e"] = jax.random.uniform(
            next(ki), (V, E), jnp.float32, -lim_e, lim_e)
        params[f"b{ae_idx}e"] = jax.random.uniform(
            next(ki), (1, E), jnp.float32, -lim_e, lim_e)
        params[f"w{ae_idx}d"] = jax.random.uniform(
            next(ki), (E, V), jnp.float32, -lim_d, lim_d)
        params[f"b{ae_idx}d"] = jax.random.uniform(
            next(ki), (1, V), jnp.float32, -lim_d, lim_d)
    return params


def _reference(x, params, config):
    """Pure-JAX f32 reference for correctness check."""
    V = (config.diagnosis_vocab_size + config.procedure_vocab_size +
         config.medication_vocab_size)
    masked = jnp.zeros((x.shape[0], V), jnp.float32)
    masked = masked.at[:, :config.diagnosis_vocab_size].set(x)

    def ae(h, i):
        z = jnp.maximum(h @ params[f"w{i}e"] + params[f"b{i}e"], 0.0)
        return z @ params[f"w{i}d"] + params[f"b{i}d"]

    o1 = ae(masked, 1) + masked
    o2 = ae(o1, 2) + o1
    o3 = ae(o2, 3) + o2
    return ((jax.nn.sigmoid(o1), jax.nn.sigmoid(o2), jax.nn.sigmoid(o3)),
            jax.nn.sigmoid(o3[:, config.diagnosis_vocab_size:]))


def _check(x, params, config, **kwargs):
    (o1, o2, o3), tail = cascaded_residual_autoencoder(x, params, config,
                                                       **kwargs)
    jax.block_until_ready((o1, o2, o3, tail))
    (r1, r2, r3), rtail = _reference(x, params, config)
    # Kernel feeds the MXU bf16 operands (f32 accumulation), so compare against
    # the f32 reference with a bf16-appropriate tolerance.
    for got, ref in ((o1, r1), (o2, r2), (o3, r3), (tail, rtail)):
        assert got.shape == ref.shape and got.dtype == ref.dtype
        assert jnp.max(jnp.abs(got - ref)) < 2e-2


if __name__ == "__main__":
    config = MediSimConfig()
    key = jax.random.PRNGKey(0)
    pkey, xkey, x2key, x3key = jax.random.split(key, 4)

    params = init_params(pkey, config)

    # Small batch: single grid step, full-batch block.
    x_small = jax.random.uniform(xkey, (2, config.diagnosis_vocab_size),
                                 jnp.float32)
    _check(x_small, params, config)

    # Batch exercising the batch grid (4 tiles of 8 rows), weights resident
    # across tiles.
    x_grid = jax.random.uniform(x2key, (32, config.diagnosis_vocab_size),
                                jnp.float32)
    _check(x_grid, params, config, batch_tile=8)

    # Mid-size batch exercising the 2-way split (v7x megacore path) with a
    # partial last tile (300 rows -> tiles of 256: 256 + 44).
    x_mid = jax.random.uniform(x3key, (300, config.diagnosis_vocab_size),
                               jnp.float32)
    _check(x_mid, params, config)

    print("KERNEL_OK")
</pallas_src>

<mosaic_0001>
module attributes {stable_mosaic.version = 11 : i64} {
  func.func @_cascaded_rae_kernel(%arg0: i32, %arg1: memref<2x128xf32, #tpu.memory_space<vmem>>, %arg2: memref<128x256xbf16, #tpu.memory_space<vmem>>, %arg3: memref<1x256xf32, #tpu.memory_space<vmem>>, %arg4: memref<256x384xbf16, #tpu.memory_space<vmem>>, %arg5: memref<1x384xf32, #tpu.memory_space<vmem>>, %arg6: memref<384x256xbf16, #tpu.memory_space<vmem>>, %arg7: memref<1x256xf32, #tpu.memory_space<vmem>>, %arg8: memref<256x384xbf16, #tpu.memory_space<vmem>>, %arg9: memref<1x384xf32, #tpu.memory_space<vmem>>, %arg10: memref<384x256xbf16, #tpu.memory_space<vmem>>, %arg11: memref<1x256xf32, #tpu.memory_space<vmem>>, %arg12: memref<256x384xbf16, #tpu.memory_space<vmem>>, %arg13: memref<1x384xf32, #tpu.memory_space<vmem>>, %arg14: memref<2x384xf32, #tpu.memory_space<vmem>>, %arg15: memref<2x384xf32, #tpu.memory_space<vmem>>, %arg16: memref<2x384xf32, #tpu.memory_space<vmem>>, %arg17: memref<2x256xf32, #tpu.memory_space<vmem>>) attributes {dimension_semantics = [#tpu.dimension_semantics<parallel>], iteration_bounds = array<i64: 1>, scalar_prefetch = 0 : i64, scratch_operands = 0 : i64, tpu.core_type = #tpu.core_type<tc>, window_params = [{transform_indices = @transform_0, window_bounds = array<i64: 2, 128>}, {pipeline_mode = #tpu.pipeline_mode<synchronous>, transform_indices = @transform_1, window_bounds = array<i64: 128, 256>}, {pipeline_mode = #tpu.pipeline_mode<synchronous>, transform_indices = @transform_2, window_bounds = array<i64: 1, 256>}, {pipeline_mode = #tpu.pipeline_mode<synchronous>, transform_indices = @transform_3, window_bounds = array<i64: 256, 384>}, {pipeline_mode = #tpu.pipeline_mode<synchronous>, transform_indices = @transform_4, window_bounds = array<i64: 1, 384>}, {pipeline_mode = #tpu.pipeline_mode<synchronous>, transform_indices = @transform_5, window_bounds = array<i64: 384, 256>}, {pipeline_mode = #tpu.pipeline_mode<synchronous>, transform_indices = @transform_6, window_bounds = array<i64: 1, 256>}, {pipeline_mode = #tpu.pipeline_mode<synchronous>, transform_indices = @transform_7, window_bounds = array<i64: 256, 384>}, {pipeline_mode = #tpu.pipeline_mode<synchronous>, transform_indices = @transform_8, window_bounds = array<i64: 1, 384>}, {pipeline_mode = #tpu.pipeline_mode<synchronous>, transform_indices = @transform_9, window_bounds = array<i64: 384, 256>}, {pipeline_mode = #tpu.pipeline_mode<synchronous>, transform_indices = @transform_10, window_bounds = array<i64: 1, 256>}, {pipeline_mode = #tpu.pipeline_mode<synchronous>, transform_indices = @transform_11, window_bounds = array<i64: 256, 384>}, {pipeline_mode = #tpu.pipeline_mode<synchronous>, transform_indices = @transform_12, window_bounds = array<i64: 1, 384>}, {transform_indices = @transform_13, window_bounds = array<i64: 2, 384>}, {transform_indices = @transform_14, window_bounds = array<i64: 2, 384>}, {transform_indices = @transform_15, window_bounds = array<i64: 2, 384>}, {transform_indices = @transform_16, window_bounds = array<i64: 2, 256>}]} {
    %c0 = arith.constant 0 : index
    %c0_0 = arith.constant 0 : index
    %0 = vector.load %arg1[%c0, %c0_0] : memref<2x128xf32, #tpu.memory_space<vmem>>, vector<2x128xf32>
    %1 = arith.truncf %0 : vector<2x128xf32> to vector<2x128xbf16>
    %c0_1 = arith.constant 0 : index
    %c0_2 = arith.constant 0 : index
    %2 = vector.load %arg2[%c0_1, %c0_2] : memref<128x256xbf16, #tpu.memory_space<vmem>>, vector<128x256xbf16>
    %cst = arith.constant dense<0.000000e+00> : vector<2x256xf32>
    %3 = tpu.matmul %1, %2, %cst {dimension_numbers = #tpu.dot_dimension_numbers<[1], [0], [0], [1], [0, 0, 1, 1], [], []>} : vector<2x128xbf16>, vector<128x256xbf16>, vector<2x256xf32> -> vector<2x256xf32>
    %c0_3 = arith.constant 0 : index
    %c0_4 = arith.constant 0 : index
    %4 = vector.load %arg3[%c0_3, %c0_4] : memref<1x256xf32, #tpu.memory_space<vmem>>, vector<1x256xf32>
    %5 = vector.broadcast %4 : vector<1x256xf32> to vector<2x256xf32>
    %6 = arith.addf %3, %5 : vector<2x256xf32>
    %cst_5 = arith.constant 0.000000e+00 : f32
    %7 = vector.broadcast %cst_5 : f32 to vector<2x256xf32>
    %8 = arith.maximumf %6, %7 : vector<2x256xf32>
    %9 = arith.truncf %8 : vector<2x256xf32> to vector<2x256xbf16>
    %c0_6 = arith.constant 0 : index
    %c0_7 = arith.constant 0 : index
    %10 = vector.load %arg4[%c0_6, %c0_7] : memref<256x384xbf16, #tpu.memory_space<vmem>>, vector<256x384xbf16>
    %cst_8 = arith.constant dense<0.000000e+00> : vector<2x384xf32>
    %11 = tpu.matmul %9, %10, %cst_8 {dimension_numbers = #tpu.dot_dimension_numbers<[1], [0], [0], [1], [0, 0, 1, 1], [], []>} : vector<2x256xbf16>, vector<256x384xbf16>, vector<2x384xf32> -> vector<2x384xf32>
    %c0_9 = arith.constant 0 : index
    %c0_10 = arith.constant 0 : index
    %12 = vector.load %arg5[%c0_9, %c0_10] : memref<1x384xf32, #tpu.memory_space<vmem>>, vector<1x384xf32>
    %13 = vector.broadcast %12 : vector<1x384xf32> to vector<2x384xf32>
    %14 = arith.addf %11, %13 : vector<2x384xf32>
    %15 = vector.extract_strided_slice %14 {offsets = [0, 0], sizes = [2, 128], strides = [1, 1]} : vector<2x384xf32> to vector<2x128xf32>
    %16 = arith.addf %15, %0 : vector<2x128xf32>
    %17 = vector.extract_strided_slice %14 {offsets = [0, 128], sizes = [2, 256], strides = [1, 1]} : vector<2x384xf32> to vector<2x256xf32>
    %18 = tpu.concatenate %16, %17 in 1 : vector<2x128xf32>, vector<2x256xf32> -> vector<2x384xf32>
    %19 = arith.truncf %18 : vector<2x384xf32> to vector<2x384xbf16>
    %c0_11 = arith.constant 0 : index
    %c0_12 = arith.constant 0 : index
    %20 = vector.load %arg6[%c0_11, %c0_12] : memref<384x256xbf16, #tpu.memory_space<vmem>>, vector<384x256xbf16>
    %cst_13 = arith.constant dense<0.000000e+00> : vector<2x256xf32>
    %21 = tpu.matmul %19, %20, %cst_13 {dimension_numbers = #tpu.dot_dimension_numbers<[1], [0], [0], [1], [0, 0, 1, 1], [], []>} : vector<2x384xbf16>, vector<384x256xbf16>, vector<2x256xf32> -> vector<2x256xf32>
    %c0_14 = arith.constant 0 : index
    %c0_15 = arith.constant 0 : index
    %22 = vector.load %arg7[%c0_14, %c0_15] : memref<1x256xf32, #tpu.memory_space<vmem>>, vector<1x256xf32>
    %23 = vector.broadcast %22 : vector<1x256xf32> to vector<2x256xf32>
    %24 = arith.addf %21, %23 : vector<2x256xf32>
    %cst_16 = arith.constant 0.000000e+00 : f32
    %25 = vector.broadcast %cst_16 : f32 to vector<2x256xf32>
    %26 = arith.maximumf %24, %25 : vector<2x256xf32>
    %27 = arith.truncf %26 : vector<2x256xf32> to vector<2x256xbf16>
    %c0_17 = arith.constant 0 : index
    %c0_18 = arith.constant 0 : index
    %28 = vector.load %arg8[%c0_17, %c0_18] : memref<256x384xbf16, #tpu.memory_space<vmem>>, vector<256x384xbf16>
    %cst_19 = arith.constant dense<0.000000e+00> : vector<2x384xf32>
    %29 = tpu.matmul %27, %28, %cst_19 {dimension_numbers = #tpu.dot_dimension_numbers<[1], [0], [0], [1], [0, 0, 1, 1], [], []>} : vector<2x256xbf16>, vector<256x384xbf16>, vector<2x384xf32> -> vector<2x384xf32>
    %c0_20 = arith.constant 0 : index
    %c0_21 = arith.constant 0 : index
    %30 = vector.load %arg9[%c0_20, %c0_21] : memref<1x384xf32, #tpu.memory_space<vmem>>, vector<1x384xf32>
    %31 = vector.broadcast %30 : vector<1x384xf32> to vector<2x384xf32>
    %32 = arith.addf %29, %31 : vector<2x384xf32>
    %33 = arith.addf %32, %18 : vector<2x384xf32>
    %34 = arith.truncf %33 : vector<2x384xf32> to vector<2x384xbf16>
    %c0_22 = arith.constant 0 : index
    %c0_23 = arith.constant 0 : index
    %35 = vector.load %arg10[%c0_22, %c0_23] : memref<384x256xbf16, #tpu.memory_space<vmem>>, vector<384x256xbf16>
    %cst_24 = arith.constant dense<0.000000e+00> : vector<2x256xf32>
    %36 = tpu.matmul %34, %35, %cst_24 {dimension_numbers = #tpu.dot_dimension_numbers<[1], [0], [0], [1], [0, 0, 1, 1], [], []>} : vector<2x384xbf16>, vector<384x256xbf16>, vector<2x256xf32> -> vector<2x256xf32>
    %c0_25 = arith.constant 0 : index
    %c0_26 = arith.constant 0 : index
    %37 = vector.load %arg11[%c0_25, %c0_26] : memref<1x256xf32, #tpu.memory_space<vmem>>, vector<1x256xf32>
    %38 = vector.broadcast %37 : vector<1x256xf32> to vector<2x256xf32>
    %39 = arith.addf %36, %38 : vector<2x256xf32>
    %cst_27 = arith.constant 0.000000e+00 : f32
    %40 = vector.broadcast %cst_27 : f32 to vector<2x256xf32>
    %41 = arith.maximumf %39, %40 : vector<2x256xf32>
    %42 = arith.truncf %41 : vector<2x256xf32> to vector<2x256xbf16>
    %c0_28 = arith.constant 0 : index
    %c0_29 = arith.constant 0 : index
    %43 = vector.load %arg12[%c0_28, %c0_29] : memref<256x384xbf16, #tpu.memory_space<vmem>>, vector<256x384xbf16>
    %cst_30 = arith.constant dense<0.000000e+00> : vector<2x384xf32>
    %44 = tpu.matmul %42, %43, %cst_30 {dimension_numbers = #tpu.dot_dimension_numbers<[1], [0], [0], [1], [0, 0, 1, 1], [], []>} : vector<2x256xbf16>, vector<256x384xbf16>, vector<2x384xf32> -> vector<2x384xf32>
    %c0_31 = arith.constant 0 : index
    %c0_32 = arith.constant 0 : index
    %45 = vector.load %arg13[%c0_31, %c0_32] : memref<1x384xf32, #tpu.memory_space<vmem>>, vector<1x384xf32>
    %46 = vector.broadcast %45 : vector<1x384xf32> to vector<2x384xf32>
    %47 = arith.addf %44, %46 : vector<2x384xf32>
    %48 = arith.addf %47, %33 : vector<2x384xf32>
    %49 = arith.negf %48 : vector<2x384xf32>
    %50 = math.exp %49 : vector<2x384xf32>
    %cst_33 = arith.constant 1.000000e+00 : f32
    %51 = vector.broadcast %cst_33 : f32 to vector<2x384xf32>
    %52 = arith.addf %51, %50 : vector<2x384xf32>
    %53 = arith.divf %51, %52 : vector<2x384xf32>
    %54 = arith.negf %18 : vector<2x384xf32>
    %55 = math.exp %54 : vector<2x384xf32>
    %cst_34 = arith.constant 1.000000e+00 : f32
    %56 = vector.broadcast %cst_34 : f32 to vector<2x384xf32>
    %57 = arith.addf %56, %55 : vector<2x384xf32>
    %58 = arith.divf %56, %57 : vector<2x384xf32>
    %c0_35 = arith.constant 0 : index
    %c0_36 = arith.constant 0 : index
    %59 = vector.load %arg14[%c0_35, %c0_36] : memref<2x384xf32, #tpu.memory_space<vmem>>, vector<2x384xf32>
    tpu.vector_store %arg14[%c0_35, %c0_36], %58 {strides = array<i32>} : memref<2x384xf32, #tpu.memory_space<vmem>>, vector<2x384xf32>,
    %60 = arith.negf %33 : vector<2x384xf32>
    %61 = math.exp %60 : vector<2x384xf32>
    %cst_37 = arith.constant 1.000000e+00 : f32
    %62 = vector.broadcast %cst_37 : f32 to vector<2x384xf32>
    %63 = arith.addf %62, %61 : vector<2x384xf32>
    %64 = arith.divf %62, %63 : vector<2x384xf32>
    %c0_38 = arith.constant 0 : index
    %c0_39 = arith.constant 0 : index
    %65 = vector.load %arg15[%c0_38, %c0_39] : memref<2x384xf32, #tpu.memory_space<vmem>>, vector<2x384xf32>
    tpu.vector_store %arg15[%c0_38, %c0_39], %64 {strides = array<i32>} : memref<2x384xf32, #tpu.memory_space<vmem>>, vector<2x384xf32>,
    %c0_40 = arith.constant 0 : index
    %c0_41 = arith.constant 0 : index
    %66 = vector.load %arg16[%c0_40, %c0_41] : memref<2x384xf32, #tpu.memory_space<vmem>>, vector<2x384xf32>
    tpu.vector_store %arg16[%c0_40, %c0_41], %53 {strides = array<i32>} : memref<2x384xf32, #tpu.memory_space<vmem>>, vector<2x384xf32>,
    %67 = vector.extract_strided_slice %53 {offsets = [0, 128], sizes = [2, 256], strides = [1, 1]} : vector<2x384xf32> to vector<2x256xf32>
    %c0_42 = arith.constant 0 : index
    %c0_43 = arith.constant 0 : index
    %68 = vector.load %arg17[%c0_42, %c0_43] : memref<2x256xf32, #tpu.memory_space<vmem>>, vector<2x256xf32>
    tpu.vector_store %arg17[%c0_42, %c0_43], %67 {strides = array<i32>} : memref<2x256xf32, #tpu.memory_space<vmem>>, vector<2x256xf32>,
    return
  }
  func.func @transform_0(%arg0: i32) -> (i32, i32) {
    %c0_i32 = arith.constant 0 : i32
    %c0_i32_0 = arith.constant 0 : i32
    return %arg0, %c0_i32 : i32, i32
  }
  func.func @transform_1(%arg0: i32) -> (i32, i32) {
    %c0_i32 = arith.constant 0 : i32
    %c0_i32_0 = arith.constant 0 : i32
    %c0_i32_1 = arith.constant 0 : i32
    return %c0_i32, %c0_i32_0 : i32, i32
  }
  func.func @transform_2(%arg0: i32) -> (i32, i32) {
    %c0_i32 = arith.constant 0 : i32
    %c0_i32_0 = arith.constant 0 : i32
    %c0_i32_1 = arith.constant 0 : i32
    return %c0_i32, %c0_i32_0 : i32, i32
  }
  func.func @transform_3(%arg0: i32) -> (i32, i32) {
    %c0_i32 = arith.constant 0 : i32
    %c0_i32_0 = arith.constant 0 : i32
    %c0_i32_1 = arith.constant 0 : i32
    return %c0_i32, %c0_i32_0 : i32, i32
  }
  func.func @transform_4(%arg0: i32) -> (i32, i32) {
    %c0_i32 = arith.constant 0 : i32
    %c0_i32_0 = arith.constant 0 : i32
    %c0_i32_1 = arith.constant 0 : i32
    return %c0_i32, %c0_i32_0 : i32, i32
  }
  func.func @transform_5(%arg0: i32) -> (i32, i32) {
    %c0_i32 = arith.constant 0 : i32
    %c0_i32_0 = arith.constant 0 : i32
    %c0_i32_1 = arith.constant 0 : i32
    return %c0_i32, %c0_i32_0 : i32, i32
  }
  func.func @transform_6(%arg0: i32) -> (i32, i32) {
    %c0_i32 = arith.constant 0 : i32
    %c0_i32_0 = arith.constant 0 : i32
    %c0_i32_1 = arith.constant 0 : i32
    return %c0_i32, %c0_i32_0 : i32, i32
  }
  func.func @transform_7(%arg0: i32) -> (i32, i32) {
    %c0_i32 = arith.constant 0 : i32
    %c0_i32_0 = arith.constant 0 : i32
    %c0_i32_1 = arith.constant 0 : i32
    return %c0_i32, %c0_i32_0 : i32, i32
  }
  func.func @transform_8(%arg0: i32) -> (i32, i32) {
    %c0_i32 = arith.constant 0 : i32
    %c0_i32_0 = arith.constant 0 : i32
    %c0_i32_1 = arith.constant 0 : i32
    return %c0_i32, %c0_i32_0 : i32, i32
  }
  func.func @transform_9(%arg0: i32) -> (i32, i32) {
    %c0_i32 = arith.constant 0 : i32
    %c0_i32_0 = arith.constant 0 : i32
    %c0_i32_1 = arith.constant 0 : i32
    return %c0_i32, %c0_i32_0 : i32, i32
  }
  func.func @transform_10(%arg0: i32) -> (i32, i32) {
    %c0_i32 = arith.constant 0 : i32
    %c0_i32_0 = arith.constant 0 : i32
    %c0_i32_1 = arith.constant 0 : i32
    return %c0_i32, %c0_i32_0 : i32, i32
  }
  func.func @transform_11(%arg0: i32) -> (i32, i32) {
    %c0_i32 = arith.constant 0 : i32
    %c0_i32_0 = arith.constant 0 : i32
    %c0_i32_1 = arith.constant 0 : i32
    return %c0_i32, %c0_i32_0 : i32, i32
  }
  func.func @transform_12(%arg0: i32) -> (i32, i32) {
    %c0_i32 = arith.constant 0 : i32
    %c0_i32_0 = arith.constant 0 : i32
    %c0_i32_1 = arith.constant 0 : i32
    return %c0_i32, %c0_i32_0 : i32, i32
  }
  func.func @transform_13(%arg0: i32) -> (i32, i32) {
    %c0_i32 = arith.constant 0 : i32
    %c0_i32_0 = arith.constant 0 : i32
    return %arg0, %c0_i32 : i32, i32
  }
  func.func @transform_14(%arg0: i32) -> (i32, i32) {
    %c0_i32 = arith.constant 0 : i32
    %c0_i32_0 = arith.constant 0 : i32
    return %arg0, %c0_i32 : i32, i32
  }
  func.func @transform_15(%arg0: i32) -> (i32, i32) {
    %c0_i32 = arith.constant 0 : i32
    %c0_i32_0 = arith.constant 0 : i32
    return %arg0, %c0_i32 : i32, i32
  }
  func.func @transform_16(%arg0: i32) -> (i32, i32) {
    %c0_i32 = arith.constant 0 : i32
    %c0_i32_0 = arith.constant 0 : i32
    return %arg0, %c0_i32 : i32, i32
  }
}

</mosaic_0001>

<bundles_post_ra>
// kernel: tpu_custom_call.1
= control target key start
LH: loop header
LB: loop body
LE: loop exit
PB: predicated region body
PF: predicated region fallthrough
CT: control target
= control target key end

     0   :  { %s3949_s0 = inlined_call_operand.hbm [shape: f32[2,128], index: 0, kind: input, shape index: {}]   ;;  %s3950_s1 = inlined_call_operand.hbm [shape: bf16[128,256], index: 1, kind: input, shape index: {}]   ;;  %s3951_s2 = inlined_call_operand.hbm [shape: f32[1,256], index: 2, kind: input, shape index: {}]   ;;  %s3952_s3 = inlined_call_operand.hbm [shape: bf16[256,384], index: 3, kind: input, shape index: {}]   ;;  %s3953_s4 = inlined_call_operand.vmem [shape: f32[1,384], index: 4, kind: input, shape index: {}]   ;;  %s3954_s5 = inlined_call_operand.hbm [shape: bf16[384,256], index: 5, kind: input, shape index: {}]   ;;  %s3955_s6 = inlined_call_operand.vmem [shape: f32[1,256], index: 6, kind: input, shape index: {}]   ;;  %s3956_s7 = inlined_call_operand.hbm [shape: bf16[256,384], index: 7, kind: input, shape index: {}]   ;;  %s3957_s8 = inlined_call_operand.vmem [shape: f32[1,384], index: 8, kind: input, shape index: {}]   ;;  %s3958_s9 = inlined_call_operand.hbm [shape: bf16[384,256], index: 9, kind: input, shape index: {}]   ;;  %s3959_s10 = inlined_call_operand.vmem [shape: f32[1,256], index: 10, kind: input, shape index: {}]   ;;  %s3960_s11 = inlined_call_operand.hbm [shape: bf16[256,384], index: 11, kind: input, shape index: {}]   ;;  %s3961_s12 = inlined_call_operand.vmem [shape: f32[1,384], index: 12, kind: input, shape index: {}]   ;;  %s3962_s13 = inlined_call_operand.hbm [shape: f32[2,384], index: 13, kind: output, shape index: {0}]   ;;  %s3963_s14 = inlined_call_operand.hbm [shape: f32[2,384], index: 14, kind: output, shape index: {1}]   ;;  %s3964_s15 = inlined_call_operand.hbm [shape: f32[2,384], index: 15, kind: output, shape index: {2}]   ;;  %s3965_s16 = inlined_call_operand.hbm [shape: f32[2,256], index: 16, kind: output, shape index: {3}]  }
   0x1   :  { %3971 = sst [smem:[#allocation30_spill]] %s3949_s0 }
   0x2   :  { %22 = vsyncpa [#allocation3], 0 }
   0x3   :  { %23 = vsyncpa [#allocation6], 0 }
   0x4   :  { %24 = vsyncpa [#allocation9], 0 }
   0x5   :  { %25 = vsyncpa [#allocation12], 0 }
   0x6   :  { %26 = vsyncpa [#allocation15], 0 }
   0x7   :  { %27 = vsyncpa [#allocation4], 0 }
   0x8   :  { %28 = vsyncpa [#allocation18], 0 }
   0x9   :  { %29 = vsyncpa [#allocation21], 0  ;;  %s3576_s21 = smov [#allocation5]   ;;  %s3296_s25 = scalar_lea.hbm %s3950_s1, 2048 }
   0xa   :  { %s45_s22 = sshll.u32 %s3576_s21, 4  ;;  %p3297_p0 = scmp.ne.s32.totalorder %s3950_s1, %s3296_s25  ;;  %s46_s22 = int_to_ptr.vmem [resolvable:$true] %s45_s22 }
   0xb   :  { %p3300_p1 = scmp.lt.u32.totalorder %s3296_s25, %s3950_s1 }
   0xd   :  { %p3302_p2 = pnand %p3300_p1, %p3297_p0 }
   0xf   :  { %3305 = shalt.err (!%p3302_p2)
}
  0x10   :  { %s3306_s30 = scalar_lea.vmem %s46_s22, 2048  ;;  %p3311_p4 = scmp.lt.s32.totalorder %s46_s22, %s46_s22 }
  0x11   :  { %p3307_p3 = scmp.ne.s32.totalorder %s46_s22, %s3306_s30  ;;  %p3312_p5 = scmp.lt.s32.totalorder %s3306_s30, %s3306_s30 }
  0x13   :  { %p3313_p6 = por %p3312_p5, %p3311_p4 }
  0x15   :  { %p3314_p7 = pnand %p3313_p6, %p3307_p3 }
  0x17   :  { %3317 = shalt.err (!%p3314_p7)
}
  0x18   :  { %s3967_s0 = smov 128   ;;  %s3969_s17 = smov 8  }
  0x19   :  { %51 = dma.hbm_to_vmem [thread:$0]  %s3950_s1, 2048, %s46_s22, [#allocation6], %s3967_s0, %s3967_s0, %s3969_s17  }
  0x1a   :  { %s3579_s20 = smov [#allocation8]   ;;  %s3318_s25 = scalar_lea.hbm %s3952_s3, 6144 }
  0x1b   :  { %s67_s21 = sshll.u32 %s3579_s20, 4  ;;  %p3319_p8 = scmp.ne.s32.totalorder %s3952_s3, %s3318_s25  ;;  %s68_s21 = int_to_ptr.vmem [resolvable:$true] %s67_s21 }
  0x1c   :  { %p3322_p9 = scmp.lt.u32.totalorder %s3318_s25, %s3952_s3 }
  0x1e   :  { %p3324_p10 = pnand %p3322_p9, %p3319_p8 }
  0x20   :  { %3327 = shalt.err (!%p3324_p10)
}
  0x21   :  { %s3328_s30 = scalar_lea.vmem %s68_s21, 6144  ;;  %p3333_p12 = scmp.lt.s32.totalorder %s68_s21, %s68_s21 }
  0x22   :  { %p3329_p11 = scmp.ne.s32.totalorder %s68_s21, %s3328_s30  ;;  %p3334_p13 = scmp.lt.s32.totalorder %s3328_s30, %s3328_s30 }
  0x24   :  { %p3335_p0 = por %p3334_p13, %p3333_p12 }
  0x26   :  { %p3336_p1 = pnand %p3335_p0, %p3329_p11 }
  0x28   :  { %3339 = shalt.err (!%p3336_p1)
}
  0x29   :  { %s3580_s1 = smov 192   ;;  %s3581_s22 = smov 12  }
  0x2a   :  { %73 = dma.hbm_to_vmem [thread:$0]  %s3952_s3, 6144, %s68_s21, [#allocation9], %s3580_s1, %s3580_s1, %s3581_s22  }
  0x2b   :  { %s3582_s20 = smov [#allocation11]   ;;  %s3583_s24 = smov [#allocation2]  }
  0x2c   :  { %s95_s23 = sshll.u32 %s3582_s20, 4  ;;  %s36_s25 = sshll.u32 %s3583_s24, 4  ;;  %s96_s23 = int_to_ptr.vmem [resolvable:$true] %s95_s23  ;;  %s37_s25 = int_to_ptr.vmem [resolvable:$true] %s36_s25 }
  0x2d   :  { %s3340_s28 = scalar_lea.hbm %s3956_s7, 6144 }
  0x2e   :  { %p3341_p2 = scmp.ne.s32.totalorder %s3956_s7, %s3340_s28  ;;  %p3344_p3 = scmp.lt.u32.totalorder %s3340_s28, %s3956_s7 }
  0x30   :  { %p3346_p4 = pnand %p3344_p3, %p3341_p2 }
  0x32   :  { %3349 = shalt.err (!%p3346_p4)
}
  0x33   :  { %s3350_s3 = scalar_lea.vmem %s96_s23, 6144  ;;  %p3355_p6 = scmp.lt.s32.totalorder %s96_s23, %s96_s23 }
  0x34   :  { %p3351_p5 = scmp.ne.s32.totalorder %s96_s23, %s3350_s3  ;;  %p3356_p7 = scmp.lt.s32.totalorder %s3350_s3, %s3350_s3 }
  0x36   :  { %p3357_p8 = por %p3356_p7, %p3355_p6 }
  0x38   :  { %p3358_p9 = pnand %p3357_p8, %p3351_p5 }
  0x3a   :  { %3361 = shalt.err (!%p3358_p9)
}
  0x3b   :  { %101 = dma.hbm_to_vmem [thread:$0]  %s3956_s7, 6144, %s96_s23, [#allocation12], %s3580_s1, %s3580_s1, %s3581_s22  }
  0x3c   :  { %s3972_s0 = sld [smem:[#allocation30_spill]] }
  0x42   :  { %s3362_s17 = scalar_lea.hbm %s3972_s0, 32 }
  0x43   :  { %p3363_p10 = scmp.ne.s32.totalorder %s3972_s0, %s3362_s17  ;;  %p3366_p11 = scmp.lt.u32.totalorder %s3362_s17, %s3972_s0 }
  0x45   :  { %p3368_p12 = pnand %p3366_p11, %p3363_p10 }
  0x47   :  { %3371 = shalt.err (!%p3368_p12)
}
  0x48   :  { %s3372_s29 = scalar_lea.vmem %s37_s25, 32  ;;  %p3377_p0 = scmp.lt.s32.totalorder %s37_s25, %s37_s25 }
  0x49   :  { %p3373_p13 = scmp.ne.s32.totalorder %s37_s25, %s3372_s29  ;;  %p3378_p1 = scmp.lt.s32.totalorder %s3372_s29, %s3372_s29 }
  0x4b   :  { %p3379_p2 = por %p3378_p1, %p3377_p0 }
  0x4d   :  { %p3380_p3 = pnand %p3379_p2, %p3373_p13 }
  0x4f   :  { %3383 = shalt.err (!%p3380_p3)
}
  0x50   :  { %39 = dma.hbm_to_vmem [thread:$0]  %s3972_s0, 32, %s37_s25, [#allocation3]  }
  0x51   :  { %s3584_s30 = smov [#allocation7]   ;;  %s3585_s21 = smov [#allocation10]  }
  0x52   :  { %s58_s3 = sshll.u32 %s3584_s30, 4  ;;  %s81_s18 = sshll.u32 %s3585_s21, 4  ;;  %s59_s3 = int_to_ptr.vmem [resolvable:$true] %s58_s3  ;;  %s3736_s18 = int_to_ptr.vmem [resolvable:$true] %s81_s18 }
  0x53   :  { %s3384_s17 = scalar_lea.hbm %s3951_s2, 32 }
  0x54   :  { %p3385_p4 = scmp.ne.s32.totalorder %s3951_s2, %s3384_s17  ;;  %p3388_p5 = scmp.lt.u32.totalorder %s3384_s17, %s3951_s2 }
  0x56   :  { %p3390_p6 = pnand %p3388_p5, %p3385_p4 }
  0x58   :  { %3393 = shalt.err (!%p3390_p6)
}
  0x59   :  { %s3394_s25 = scalar_lea.vmem %s59_s3, 32  ;;  %p3399_p8 = scmp.lt.s32.totalorder %s59_s3, %s59_s3 }
  0x5a   :  { %p3395_p7 = scmp.ne.s32.totalorder %s59_s3, %s3394_s25  ;;  %p3400_p9 = scmp.lt.s32.totalorder %s3394_s25, %s3394_s25 }
  0x5c   :  { %p3401_p10 = por %p3400_p9, %p3399_p8 }
  0x5e   :  { %p3402_p11 = pnand %p3401_p10, %p3395_p7 }
  0x60   :  { %3405 = shalt.err (!%p3402_p11)
}
  0x61   :  { %61 = dma.hbm_to_vmem [thread:$0]  %s3951_s2, 32, %s59_s3, [#allocation6]  }
  0x62   :  { %s3406_s30 = scalar_lea.hbm %s3954_s5, 6144 }
  0x63   :  { %p3407_p12 = scmp.ne.s32.totalorder %s3954_s5, %s3406_s30  ;;  %p3410_p13 = scmp.lt.u32.totalorder %s3406_s30, %s3954_s5 }
  0x65   :  { %p3412_p0 = pnand %p3410_p13, %p3407_p12 }
  0x67   :  { %3415 = shalt.err (!%p3412_p0)
}
  0x68   :  { %s3416_s24 = scalar_lea.vmem %s3736_s18, 6144  ;;  %p3421_p2 = scmp.lt.s32.totalorder %s3736_s18, %s3736_s18 }
  0x69   :  { %p3417_p1 = scmp.ne.s32.totalorder %s3736_s18, %s3416_s24  ;;  %p3422_p3 = scmp.lt.s32.totalorder %s3416_s24, %s3416_s24 }
  0x6b   :  { %p3423_p4 = por %p3422_p3, %p3421_p2 }
  0x6d   :  { %p3424_p5 = pnand %p3423_p4, %p3417_p1 }
  0x6f   :  { %3427 = shalt.err (!%p3424_p5)
}
  0x70   :  { %s3973_s2 = smov 8   ;;  %s3974_s3 = smov 128  }
  0x71   :  { %87 = dma.hbm_to_vmem [thread:$0]  %s3954_s5, 6144, %s3736_s18, [#allocation9], %s3974_s3, %s3974_s3, %s3973_s2  }
  0x72   :  { %s3586_s28 = smov [#allocation13]   ;;  %s3587_s0 = smov [#allocation14]  }
  0x73   :  { %s109_s25 = sshll.u32 %s3586_s28, 4  ;;  %s123_s29 = sshll.u32 %s3587_s0, 4  ;;  %s110_s25 = int_to_ptr.vmem [resolvable:$true] %s109_s25  ;;  %s3770_s29 = int_to_ptr.vmem [resolvable:$true] %s123_s29 }
  0x74   :  { %s3428_s30 = scalar_lea.hbm %s3958_s9, 6144 }
  0x75   :  { %p3429_p6 = scmp.ne.s32.totalorder %s3958_s9, %s3428_s30  ;;  %p3432_p7 = scmp.lt.u32.totalorder %s3428_s30, %s3958_s9 }
  0x77   :  { %p3434_p8 = pnand %p3432_p7, %p3429_p6 }
  0x79   :  { %3437 = shalt.err (!%p3434_p8)
}
  0x7a   :  { %s3438_s5 = scalar_lea.vmem %s110_s25, 6144  ;;  %p3443_p10 = scmp.lt.s32.totalorder %s110_s25, %s110_s25 }
  0x7b   :  { %p3439_p9 = scmp.ne.s32.totalorder %s110_s25, %s3438_s5  ;;  %p3444_p11 = scmp.lt.s32.totalorder %s3438_s5, %s3438_s5 }
  0x7d   :  { %p3445_p12 = por %p3444_p11, %p3443_p10 }
  0x7f   :  { %p3446_p13 = pnand %p3445_p12, %p3439_p9 }
  0x81   :  { %3449 = shalt.err (!%p3446_p13)
}
  0x82   :  { %115 = dma.hbm_to_vmem [thread:$0]  %s3958_s9, 6144, %s110_s25, [#allocation12], %s3974_s3, %s3974_s3, %s3973_s2  }
  0x83   :  { %s3450_s28 = scalar_lea.hbm %s3960_s11, 6144 }
  0x84   :  { %p3451_p0 = scmp.ne.s32.totalorder %s3960_s11, %s3450_s28  ;;  %p3454_p1 = scmp.lt.u32.totalorder %s3450_s28, %s3960_s11 }
  0x86   :  { %p3456_p2 = pnand %p3454_p1, %p3451_p0 }
  0x88   :  { %3459 = shalt.err (!%p3456_p2)
}
  0x89   :  { %s3460_s21 = scalar_lea.vmem %s3770_s29, 6144  ;;  %p3465_p4 = scmp.lt.s32.totalorder %s3770_s29, %s3770_s29 }
  0x8a   :  { %p3461_p3 = scmp.ne.s32.totalorder %s3770_s29, %s3460_s21  ;;  %p3466_p5 = scmp.lt.s32.totalorder %s3460_s21, %s3460_s21 }
  0x8c   :  { %p3467_p6 = por %p3466_p5, %p3465_p4 }
  0x8e   :  { %p3468_p7 = pnand %p3467_p6, %p3461_p3 }
  0x90   :  { %3471 = shalt.err (!%p3468_p7)
}
  0x91   :  { %129 = dma.hbm_to_vmem [thread:$0]  %s3960_s11, 6144, %s3770_s29, [#allocation15], %s3580_s1, %s3580_s1, %s3581_s22  }
  0x92   :  { %3560 = dma.done.wait [#allocation3], 32  }
  0x93   :  { %3561 = vsyncadd [#allocation3], 4294967264 }
  0x94   :  { %3562 = dma.done.wait [#allocation6], 2080  }
  0x95   :  { %3563 = vsyncadd [#allocation6], 4294965216 }
  0x96   :  { %3564 = dma.done.wait [#allocation9], 12288  }
  0x97   :  { %3565 = vsyncadd [#allocation9], 4294955008 }
  0x98   :  { %3566 = dma.done.wait [#allocation12], 12288  }
  0x99   :  { %3567 = vsyncadd [#allocation12], 4294955008 }
  0x9a   :  { %3568 = dma.done.wait [#allocation15], 6144  }
  0x9b   :  { %3569 = vsyncadd [#allocation15], 4294961152  ;;  %v3588_v0 = vmov 0   ;;  %v2900_v1 = vld [vmem:[#allocation5 + $0x4] ss:$8 sps:$4 sm:$0xff]   ;;  %s3591_s19 = smov [#allocation16]  }
  0x9c   :  { %299 = vmatprep.mubr.bf16.mxu0 %v3588_v0  ;;  %v2902_v2 = vld [vmem:[#allocation5] ss:$8 sps:$4 sm:$0xff]   ;;  %267 = vmatprep.subr.bf16.mxu0 %v2900_v1  ;;  %v2903_v3 = vld [vmem:[#allocation5 + $0x14] ss:$8 sps:$4 sm:$0xff]   ;;  %v2905_v4 = vld [vmem:[#allocation5 + $0x10] ss:$8 sps:$4 sm:$0xff]  }
  0x9d   :  { %268 = vmatpush1.bf16.msra.mxu0 %v2902_v2  ;;  %v2906_v5 = vld [vmem:[#allocation5 + $0x24] ss:$8 sps:$4 sm:$0xff]   ;;  %v2908_v6 = vld [vmem:[#allocation5 + $0x20] ss:$8 sps:$4 sm:$0xff]   ;;  %v2909_v7 = vld [vmem:[#allocation5 + $0x34] ss:$8 sps:$4 sm:$0xff]  }
  0x9e   :  { %269 = vmatprep.subr.bf16.mxu0 %v2903_v3  ;;  %v2911_v8 = vld [vmem:[#allocation5 + $0x30] ss:$8 sps:$4 sm:$0xff]   ;;  %v2912_v9 = vld [vmem:[#allocation5 + $0x44] ss:$8 sps:$4 sm:$0xff]   ;;  %v2914_v13 = vld [vmem:[#allocation5 + $0x40] ss:$8 sps:$4 sm:$0xff]  }
  0x9f   :  { %v2924_v10 = vld [vmem:[#allocation8 + $0x4] ss:$12 sps:$4 sm:$0xff]   ;;  %v2926_v11 = vld [vmem:[#allocation8] ss:$12 sps:$4 sm:$0xff]   ;;  %v2927_v12 = vld [vmem:[#allocation8 + $0x1c] ss:$12 sps:$4 sm:$0xff]  }
  0xa0   :  { %649 = vmatprep.subr.bf16.mxu1 %v2924_v10  ;;  %v2929_v14 = vld [vmem:[#allocation8 + $0x18] ss:$12 sps:$4 sm:$0xff]   ;;  %v2930_v15 = vld [vmem:[#allocation8 + $0x34] ss:$12 sps:$4 sm:$0xff]   ;;  %v2932_v18 = vld [vmem:[#allocation8 + $0x30] ss:$12 sps:$4 sm:$0xff]  }
  0xa1   :  { %270 = vmatpush1.bf16.msra.mxu0 %v2905_v4  ;;  %650 = vmatpush1.bf16.msra.mxu1 %v2926_v11  ;;  %v2915_v16 = vld [vmem:[#allocation5 + $0x54] ss:$8 sps:$4 sm:$0xff]   ;;  %v2917_v17 = vld [vmem:[#allocation5 + $0x50] ss:$8 sps:$4 sm:$0xff]   ;;  %v2918_v20 = vld [vmem:[#allocation5 + $0x64] ss:$8 sps:$4 sm:$0xff]  }
  0xa2   :  { %271 = vmatprep.subr.bf16.mxu0 %v2906_v5  ;;  %651 = vmatprep.subr.bf16.mxu1 %v2927_v12  ;;  %v2933_v19 = vld [vmem:[#allocation8 + $0x4c] ss:$12 sps:$4 sm:$0xff]   ;;  %v2935_v21 = vld [vmem:[#allocation8 + $0x48] ss:$12 sps:$4 sm:$0xff]   ;;  %v2936_v23 = vld [vmem:[#allocation8 + $0x64] ss:$12 sps:$4 sm:$0xff]   ;;  %v177_v5 = vlaneseq }
  0xa3   :  { %v2920_v22 = vld [vmem:[#allocation5 + $0x60] ss:$8 sps:$4 sm:$0xff]   ;;  %v2921_v24 = vld [vmem:[#allocation5 + $0x74] ss:$8 sps:$4 sm:$0xff]   ;;  %v2923_v25 = vld [vmem:[#allocation5 + $0x70] ss:$8 sps:$4 sm:$0xff]  }
  0xa4   :  { %v3808_v26 = vld [vmem:[#allocation2] sm:$0x3]  ;;  %v2938_v27 = vld [vmem:[#allocation8 + $0x60] ss:$12 sps:$4 sm:$0xff]   ;;  %v2950_v29 = vld [vmem:[#allocation8 + $0xc8] ss:$12 sps:$4 sm:$0xff]  }
  0xa5   :  { %272 = vmatpush1.bf16.msra.mxu0 %v2908_v6  ;;  %652 = vmatpush1.bf16.msra.mxu1 %v2929_v14  ;;  %v2939_v28 = vld [vmem:[#allocation8 + $0x7c] ss:$12 sps:$4 sm:$0xff]   ;;  %v158_v30 = vpack.c.bf16 %v3808_v26, %v3808_v26  ;;  %v2941_v31 = vld [vmem:[#allocation8 + $0x78] ss:$12 sps:$4 sm:$0xff]   ;;  %v2942_v32 = vld [vmem:[#allocation8 + $0x94] ss:$12 sps:$4 sm:$0xff]  }
  0xa6   :  { %273 = vmatprep.subr.bf16.mxu0 %v2909_v7  ;;  %653 = vmatprep.subr.bf16.mxu1 %v2930_v15  ;;  %v2952_v33 = vld [vmem:[#allocation8 + $0x8] ss:$12 sps:$4 sm:$0xff]   ;;  %v2955_v34 = vld [vmem:[#allocation8 + $0xe0] ss:$12 sps:$4 sm:$0xff]   ;;  %v2944_v35 = vld [vmem:[#allocation8 + $0x90] ss:$12 sps:$4 sm:$0xff]  }
  0xa7   :  { %v2945_v36 = vld [vmem:[#allocation8 + $0xac] ss:$12 sps:$4 sm:$0xff]   ;;  %v2947_v39 = vld [vmem:[#allocation8 + $0xa8] ss:$12 sps:$4 sm:$0xff]   ;;  %v2948_v40 = vld [vmem:[#allocation8 + $0xc4] ss:$12 sps:$4 sm:$0xff]  }
  0xa8   :  { %v2957_v37 = vld [vmem:[#allocation8 + $0x20] ss:$12 sps:$4 sm:$0xff]   ;;  %v2960_v38 = vld [vmem:[#allocation8 + $0xf8] ss:$12 sps:$4 sm:$0xff]   ;;  %v2965_v43 = vld [vmem:[#allocation8 + $0x110] ss:$12 sps:$4 sm:$0xff]  }
  0xa9   :  { %274 = vmatpush1.bf16.msra.mxu0 %v2911_v8  ;;  %654 = vmatpush1.bf16.msra.mxu1 %v2932_v18  ;;  %v2962_v41 = vld [vmem:[#allocation8 + $0x38] ss:$12 sps:$4 sm:$0xff]   ;;  %v2951_v42 = vld [vmem:[#allocation8 + $0xc0] ss:$12 sps:$4 sm:$0xff]   ;;  %v2953_v44 = vld [vmem:[#allocation8 + $0xdc] ss:$12 sps:$4 sm:$0xff]  }
  0xaa   :  { %275 = vmatprep.subr.bf16.mxu0 %v2912_v9  ;;  %655 = vmatprep.subr.bf16.mxu1 %v2933_v19  ;;  %v2967_v45 = vld [vmem:[#allocation8 + $0x50] ss:$12 sps:$4 sm:$0xff]   ;;  %v2970_v46 = vld [vmem:[#allocation8 + $0x128] ss:$12 sps:$4 sm:$0xff]   ;;  %v2956_v47 = vld [vmem:[#allocation8 + $0xd8] ss:$12 sps:$4 sm:$0xff]  }
  0xab   :  { %v2958_v48 = vld [vmem:[#allocation8 + $0xf4] ss:$12 sps:$4 sm:$0xff]   ;;  %v2961_v51 = vld [vmem:[#allocation8 + $0xf0] ss:$12 sps:$4 sm:$0xff]   ;;  %v2963_v52 = vld [vmem:[#allocation8 + $0x10c] ss:$12 sps:$4 sm:$0xff]  }
  0xac   :  { %v2972_v49 = vld [vmem:[#allocation8 + $0x68] ss:$12 sps:$4 sm:$0xff]   ;;  %v2975_v50 = vld [vmem:[#allocation8 + $0x140] ss:$12 sps:$4 sm:$0xff]   ;;  %v2968_v55 = vld [vmem:[#allocation8 + $0x124] ss:$12 sps:$4 sm:$0xff]  }
  0xad   :  { %276 = vmatpush1.bf16.msra.mxu0 %v2914_v13  ;;  %656 = vmatpush1.bf16.msra.mxu1 %v2935_v21  ;;  %v2977_v53 = vld [vmem:[#allocation8 + $0x80] ss:$12 sps:$4 sm:$0xff]   ;;  %v2966_v54 = vld [vmem:[#allocation8 + $0x108] ss:$12 sps:$4 sm:$0xff]   ;;  %v2976_v58 = vld [vmem:[#allocation8 + $0x138] ss:$12 sps:$4 sm:$0xff]  }
  0xae   :  { %277 = vmatprep.subr.bf16.mxu0 %v2915_v16  ;;  %657 = vmatprep.subr.bf16.mxu1 %v2936_v23  ;;  %v2971_v56 = vld [vmem:[#allocation8 + $0x120] ss:$12 sps:$4 sm:$0xff]   ;;  %v2973_v57 = vld [vmem:[#allocation8 + $0x13c] ss:$12 sps:$4 sm:$0xff]   ;;  %v2980_v60 = vld [vmem:[#allocation8 + $0x158] ss:$12 sps:$4 sm:$0xff]  }
  0xaf   :  { %v2978_v59 = vld [vmem:[#allocation8 + $0x154] ss:$12 sps:$4 sm:$0xff]   ;;  %v2981_v61 = vld [vmem:[#allocation8 + $0x150] ss:$12 sps:$4 sm:$0xff]   ;;  %v2982_v62 = vld [vmem:[#allocation8 + $0x98] ss:$12 sps:$4 sm:$0xff]  }
  0xb0   :  { %v2983_v63 = vld [vmem:[#allocation8 + $0x16c] ss:$12 sps:$4 sm:$0xff]   ;;  %v2985_v1 = vld [vmem:[#allocation8 + $0x170] ss:$12 sps:$4 sm:$0xff]   ;;  %v2986_v2 = vld [vmem:[#allocation8 + $0x168] ss:$12 sps:$4 sm:$0xff]  }
  0xb1   :  { %278 = vmatpush1.bf16.msra.mxu0 %v2917_v17  ;;  %658 = vmatpush1.bf16.msra.mxu1 %v2938_v27  ;;  %v2987_v3 = vld [vmem:[#allocation8 + $0xb0] ss:$12 sps:$4 sm:$0xff]   ;;  %v2990_v4 = vld [vmem:[#allocation10 + $0x4] ss:$8 sps:$4 sm:$0xff]   ;;  %v3812_v6 = vshrl.u32 %v177_v5, 7  ;;  %s2484_s20 = sshll.u32 %s3591_s19, 4  ;;  %s2485_s20 = int_to_ptr.vmem [resolvable:$true] %s2484_s20 }
  0xb2   :  { %279 = vmatprep.subr.bf16.mxu0 %v2918_v20  ;;  %659 = vmatprep.subr.bf16.mxu1 %v2939_v28  ;;  %v175_v8 = vld [vmem:[#allocation7] sm:$0x3]  ;;  %v2988_v21 = vld [vmem:[#allocation10] ss:$8 sps:$4 sm:$0xff]  }
  0xb3   :  { %v3815_v7 = vsub.s32 0, %v3812_v6  ;;  %v3818_v9 = vsub.s32 1, %v3812_v6  ;;  %v2993_v23 = vld [vmem:[#allocation10 + $0x14] ss:$8 sps:$4 sm:$0xff]   ;;  %v2994_v27 = vld [vmem:[#allocation10 + $0x20] ss:$8 sps:$4 sm:$0xff]  }
  0xb4   :  { %v2999_v28 = vld [vmem:[#allocation10 + $0x34] ss:$8 sps:$4 sm:$0xff]  }
  0xb5   :  { %280 = vmatpush1.bf16.msra.mxu0 %v2920_v22  ;;  %660 = vmatpush1.bf16.msra.mxu1 %v2941_v31  ;;  %v180_v10 = vrot.slane %v175_v8, %v3815_v7  ;;  %v184_v11 = vrot.slane %v175_v8, %v3818_v9  ;;  %v3000_v31 = vld [vmem:[#allocation10 + $0x40] ss:$8 sps:$4 sm:$0xff]   ;;  %v3078_v5 = vld [vmem:[#allocation11 + $0x90] ss:$12 sps:$4 sm:$0xff]   ;;  %v3083_v8 = vld [vmem:[#allocation11 + $0xac] ss:$12 sps:$4 sm:$0xff]  }
  0xb6   :  { %281 = vmatprep.subr.bf16.mxu0 %v2921_v24  ;;  %661 = vmatprep.subr.bf16.mxu1 %v2942_v32  ;;  %v2991_v24 = vld [vmem:[#allocation10 + $0x10] ss:$8 sps:$4 sm:$0xff]   ;;  %v3005_v32 = vld [vmem:[#allocation10 + $0x54] ss:$8 sps:$4 sm:$0xff]  }
  0xb9   :  { %282 = vmatpush1.bf16.msra.mxu0 %v2923_v25  ;;  %662 = vmatpush1.bf16.msra.mxu1 %v2944_v35  ;;  %v2996_v25 = vld [vmem:[#allocation10 + $0x24] ss:$8 sps:$4 sm:$0xff]   ;;  %v3006_v35 = vld [vmem:[#allocation10 + $0x60] ss:$8 sps:$4 sm:$0xff]  }
  0xba   :  { %2804 = vmatprep.subr.bf16.mxu0 %v2950_v29  ;;  %663 = vmatprep.subr.bf16.mxu1 %v2945_v36  ;;  %v2997_v29 = vld [vmem:[#allocation10 + $0x30] ss:$8 sps:$4 sm:$0xff]   ;;  %v3011_v36 = vld [vmem:[#allocation10 + $0x74] ss:$8 sps:$4 sm:$0xff]  }
  0xbc   :  { %300 = vmatmul.mubr.bf16.vlgmr.msra.gmra.mrb[0].mxu0 %v158_v30  ;;  %v3002_v30 = vld [vmem:[#allocation10 + $0x44] ss:$8 sps:$4 sm:$0xff]  }
  0xbd   :  { %2805 = vmatpush3.bf16.msra.mxu0 %v2952_v33  ;;  %664 = vmatpush1.bf16.msra.mxu1 %v2947_v39  ;;  %v3003_v33 = vld [vmem:[#allocation10 + $0x50] ss:$8 sps:$4 sm:$0xff]   ;;  %v3012_v39 = vld [vmem:[#allocation10 + $0x80] ss:$8 sps:$4 sm:$0xff]  }
  0xbe   :  { %2806 = vmatprep.subr.bf16.mxu0 %v2955_v34  ;;  %665 = vmatprep.subr.bf16.mxu1 %v2948_v40  ;;  %v3008_v34 = vld [vmem:[#allocation10 + $0x64] ss:$8 sps:$4 sm:$0xff]   ;;  %v3017_v40 = vld [vmem:[#allocation10 + $0x94] ss:$8 sps:$4 sm:$0xff]  }
  0xc1   :  { %2807 = vmatpush3.bf16.msra.mxu0 %v2957_v37  ;;  %666 = vmatpush1.bf16.msra.mxu1 %v2951_v42  ;;  %v3009_v37 = vld [vmem:[#allocation10 + $0x70] ss:$8 sps:$4 sm:$0xff]   ;;  %v3020_v42 = vld [vmem:[#allocation10 + $0xa4] ss:$8 sps:$4 sm:$0xff]  }
  0xc2   :  { %2808 = vmatprep.subr.bf16.mxu0 %v2960_v38  ;;  %667 = vmatprep.subr.bf16.mxu1 %v2953_v44  ;;  %v3014_v38 = vld [vmem:[#allocation10 + $0x84] ss:$8 sps:$4 sm:$0xff]   ;;  %v3023_v44 = vld [vmem:[#allocation10 + $0xb4] ss:$8 sps:$4 sm:$0xff]  }
  0xc5   :  { %2809 = vmatpush3.bf16.msra.mxu0 %v2962_v41  ;;  %668 = vmatpush1.bf16.msra.mxu1 %v2956_v47  ;;  %v3015_v41 = vld [vmem:[#allocation10 + $0x90] ss:$8 sps:$4 sm:$0xff]   ;;  %v3024_v47 = vld [vmem:[#allocation10 + $0xc0] ss:$8 sps:$4 sm:$0xff]  }
  0xc6   :  { %2810 = vmatprep.subr.bf16.mxu0 %v2965_v43  ;;  %669 = vmatprep.subr.bf16.mxu1 %v2958_v48  ;;  %v3018_v43 = vld [vmem:[#allocation10 + $0xa0] ss:$8 sps:$4 sm:$0xff]   ;;  %v3029_v48 = vld [vmem:[#allocation10 + $0xd4] ss:$8 sps:$4 sm:$0xff]  }
  0xc9   :  { %2811 = vmatpush3.bf16.msra.mxu0 %v2967_v45  ;;  %670 = vmatpush1.bf16.msra.mxu1 %v2961_v51  ;;  %v3021_v45 = vld [vmem:[#allocation10 + $0xb0] ss:$8 sps:$4 sm:$0xff]   ;;  %v3030_v51 = vld [vmem:[#allocation10 + $0xe0] ss:$8 sps:$4 sm:$0xff]  }
  0xca   :  { %2812 = vmatprep.subr.bf16.mxu0 %v2970_v46  ;;  %671 = vmatprep.subr.bf16.mxu1 %v2963_v52  ;;  %v3026_v46 = vld [vmem:[#allocation10 + $0xc4] ss:$8 sps:$4 sm:$0xff]   ;;  %v3035_v52 = vld [vmem:[#allocation10 + $0xf4] ss:$8 sps:$4 sm:$0xff]  }
  0xcd   :  { %2813 = vmatpush3.bf16.msra.mxu0 %v2972_v49  ;;  %672 = vmatpush1.bf16.msra.mxu1 %v2966_v54  ;;  %v3027_v49 = vld [vmem:[#allocation10 + $0xd0] ss:$8 sps:$4 sm:$0xff]   ;;  %v3038_v54 = vld [vmem:[#allocation10 + $0x104] ss:$8 sps:$4 sm:$0xff]  }
  0xce   :  { %2814 = vmatprep.subr.bf16.mxu0 %v2975_v50  ;;  %673 = vmatprep.subr.bf16.mxu1 %v2968_v55  ;;  %v3032_v50 = vld [vmem:[#allocation10 + $0xe4] ss:$8 sps:$4 sm:$0xff]  }
  0xcf   :  { %v3060_v55 = vld [vmem:[#allocation11] ss:$12 sps:$4 sm:$0xff]  }
  0xd1   :  { %2815 = vmatpush3.bf16.msra.mxu0 %v2977_v53  ;;  %674 = vmatpush1.bf16.msra.mxu1 %v2971_v56  ;;  %v3033_v53 = vld [vmem:[#allocation10 + $0xf0] ss:$8 sps:$4 sm:$0xff]  }
  0xd2   :  { %675 = vmatprep.subr.bf16.mxu1 %v2973_v57  ;;  %2816 = vmatprep.subr.bf16.mxu0 %v2980_v60  ;;  %v3062_v56 = vld [vmem:[#allocation11 + $0x4] ss:$12 sps:$4 sm:$0xff]   ;;  %v3065_v57 = vld [vmem:[#allocation11 + $0x1c] ss:$12 sps:$4 sm:$0xff]  }
  0xd3   :  { %v3066_v60 = vld [vmem:[#allocation11 + $0x30] ss:$12 sps:$4 sm:$0xff]  }
  0xd5   :  { %676 = vmatpush1.bf16.msra.mxu1 %v2976_v58  ;;  %2817 = vmatpush3.bf16.msra.mxu0 %v2982_v62  ;;  %v3063_v58 = vld [vmem:[#allocation11 + $0x18] ss:$12 sps:$4 sm:$0xff]   ;;  %v3069_v62 = vld [vmem:[#allocation11 + $0x48] ss:$12 sps:$4 sm:$0xff]  }
  0xd6   :  { %677 = vmatprep.subr.bf16.mxu1 %v2978_v59  ;;  %2818 = vmatprep.subr.bf16.mxu0 %v2985_v1  ;;  %v3068_v59 = vld [vmem:[#allocation11 + $0x34] ss:$12 sps:$4 sm:$0xff]  }
  0xd7   :  { %v3072_v1 = vld [vmem:[#allocation11 + $0x60] ss:$12 sps:$4 sm:$0xff]  }
  0xd9   :  { %678 = vmatpush1.bf16.msra.mxu1 %v2981_v61  ;;  %2819 = vmatpush3.bf16.msra.mxu0 %v2987_v3  ;;  %v3071_v61 = vld [vmem:[#allocation11 + $0x4c] ss:$12 sps:$4 sm:$0xff]  }
  0xda   :  { %679 = vmatprep.subr.bf16.mxu1 %v2983_v63  ;;  %1034 = vmatprep.subr.bf16.mxu0 %v2990_v4  ;;  %v3074_v63 = vld [vmem:[#allocation11 + $0x64] ss:$12 sps:$4 sm:$0xff]   ;;  %v3080_v4 = vld [vmem:[#allocation11 + $0x94] ss:$12 sps:$4 sm:$0xff]  }
  0xdb   :  { %v3075_v3 = vld [vmem:[#allocation11 + $0x78] ss:$12 sps:$4 sm:$0xff]  }
  0xdd   :  { %680 = vmatpush1.bf16.msra.mxu1 %v2986_v2  ;;  %v3077_v2 = vld [vmem:[#allocation11 + $0x7c] ss:$12 sps:$4 sm:$0xff]  }
  0xde   :  { %1457 = vmatprep.subr.bf16.mxu1 %v3062_v56  ;;  %v3050_v56 = vld [vmem:[#allocation10 + $0x144] ss:$8 sps:$4 sm:$0xff]  }
 0x18f   :  { %v301_v12 = vpop.f32.mrb[0].mxu0 }
 0x190   :  { %v302_v13 = vadd.f32 %v301_v12, %v180_v10  ;;  %v303_v14 = vpop.f32.mrb[1].mxu0  ;;  %v3081_v10 = vld [vmem:[#allocation11 + $0xa8] ss:$12 sps:$4 sm:$0xff]   ;;  %v3084_v12 = vld [vmem:[#allocation11 + $0xc0] ss:$12 sps:$4 sm:$0xff]  }
 0x191   :  { %v304_v15 = vadd.f32 %v303_v14, %v184_v11  ;;  %v305_v16 = vpop.f32.mrb[2].mxu0  ;;  %v3086_v11 = vld [vmem:[#allocation11 + $0xc4] ss:$12 sps:$4 sm:$0xff]  }
 0x192   :  { %v308_v17 = vmax.f32 %v302_v13, 0.0  ;;  %v306_v18 = vpop.f32.mrb[3].mxu0  ;;  %v3089_v13 = vld [vmem:[#allocation11 + $0xdc] ss:$12 sps:$4 sm:$0xff]   ;;  %v3087_v14 = vld [vmem:[#allocation11 + $0xd8] ss:$12 sps:$4 sm:$0xff]  }
 0x193   :  { %v309_v19 = vmax.f32 %v304_v15, 0.0  ;;  %v3092_v15 = vld [vmem:[#allocation11 + $0xf4] ss:$12 sps:$4 sm:$0xff]   ;;  %v3090_v16 = vld [vmem:[#allocation11 + $0xf0] ss:$12 sps:$4 sm:$0xff]  }
 0x194   :  { %v310_v22 = vpack.c.bf16 %v308_v17, %v308_v17  ;;  %v3095_v17 = vld [vmem:[#allocation11 + $0x10c] ss:$12 sps:$4 sm:$0xff]   ;;  %v3093_v18 = vld [vmem:[#allocation11 + $0x108] ss:$12 sps:$4 sm:$0xff]  }
 0x195   :  { %v311_v20 = vpack.c.bf16 %v309_v19, %v309_v19  ;;  %v3098_v19 = vld [vmem:[#allocation11 + $0x124] ss:$12 sps:$4 sm:$0xff]  }
 0x197   :  { %681 = vmatprep.mubr.bf16.mxu1 %v311_v20  ;;  %722 = vmatprep.mubr.bf16.mxu0 %v311_v20  ;;  %v3096_v20 = vld [vmem:[#allocation11 + $0x120] ss:$12 sps:$4 sm:$0xff]  }
 0x198   :  { %682 = vmatmul.mubr.bf16.vlgmr.msra.gmra.mrb[0].mxu1 %v310_v22  ;;  %723 = vmatmul.mubr.bf16.vlgmr.msra.gmra.mrb[4].mxu0 %v310_v22  ;;  %v3099_v22 = vld [vmem:[#allocation11 + $0x138] ss:$12 sps:$4 sm:$0xff]  }
 0x199   :  { %1035 = vmatpush1.bf16.msra.mxu0 %v2988_v21  ;;  %1458 = vmatpush1.bf16.msra.mxu1 %v3060_v55  ;;  %v3101_v21 = vld [vmem:[#allocation11 + $0x13c] ss:$12 sps:$4 sm:$0xff]  }
 0x19a   :  { %1036 = vmatprep.subr.bf16.mxu0 %v2993_v23  ;;  %1459 = vmatprep.subr.bf16.mxu1 %v3065_v57  ;;  %v376_v23 = vld [vmem:[%s3953_s4] sm:$0x7] }
 0x19d   :  { %1037 = vmatpush1.bf16.msra.mxu0 %v2991_v24  ;;  %1460 = vmatpush1.bf16.msra.mxu1 %v3063_v58  ;;  %v3826_v24 = vsub.s32 2, %v3812_v6 }
 0x19e   :  { %1038 = vmatprep.subr.bf16.mxu0 %v2996_v25  ;;  %1461 = vmatprep.subr.bf16.mxu1 %v3068_v59  ;;  %v381_v25 = vrot.slane %v376_v23, %v3815_v7 }
 0x1a1   :  { %1039 = vmatpush1.bf16.msra.mxu0 %v2994_v27  ;;  %1462 = vmatpush1.bf16.msra.mxu1 %v3066_v60  ;;  %v385_v27 = vrot.slane %v376_v23, %v3818_v9  ;;  %v3048_v60 = vld [vmem:[#allocation10 + $0x140] ss:$8 sps:$4 sm:$0xff]  }
 0x1a2   :  { %1040 = vmatprep.subr.bf16.mxu0 %v2999_v28  ;;  %1463 = vmatprep.subr.bf16.mxu1 %v3071_v61  ;;  %v3589_v61 = vmov 1983009808  }
 0x1a5   :  { %1041 = vmatpush1.bf16.msra.mxu0 %v2997_v29  ;;  %1464 = vmatpush1.bf16.msra.mxu1 %v3069_v62  ;;  %v2392_v62 = vunpack.c.l.s4 %v3589_v61 }
 0x1a6   :  { %1042 = vmatprep.subr.bf16.mxu0 %v3002_v30  ;;  %1465 = vmatprep.subr.bf16.mxu1 %v3074_v63  ;;  %v389_v30 = vrot.slane %v376_v23, %v3826_v24  ;;  %v3053_v63 = vld [vmem:[#allocation10 + $0x154] ss:$8 sps:$4 sm:$0xff]   ;;  %v3124_v23 = vld [vmem:[#allocation13] ss:$8 sps:$4 sm:$0xff]  }
 0x1a9   :  { %1043 = vmatpush1.bf16.msra.mxu0 %v3000_v31  ;;  %1466 = vmatpush1.bf16.msra.mxu1 %v3072_v1  ;;  %v3051_v1 = vld [vmem:[#allocation10 + $0x150] ss:$8 sps:$4 sm:$0xff]  }
 0x1aa   :  { %1044 = vmatprep.subr.bf16.mxu0 %v3005_v32  ;;  %1467 = vmatprep.subr.bf16.mxu1 %v3077_v2  ;;  %v2393_v2 = vunpack.c.0.s8 %v2392_v62 }
 0x1ad   :  { %1045 = vmatpush1.bf16.msra.mxu0 %v3003_v33  ;;  %1468 = vmatpush1.bf16.msra.mxu1 %v3075_v3  ;;  %v3056_v3 = vld [vmem:[#allocation10 + $0x164] ss:$8 sps:$4 sm:$0xff]  }
 0x1ae   :  { %1046 = vmatprep.subr.bf16.mxu0 %v3008_v34  ;;  %1469 = vmatprep.subr.bf16.mxu1 %v3080_v4  ;;  %v3054_v4 = vld [vmem:[#allocation10 + $0x160] ss:$8 sps:$4 sm:$0xff]  }
 0x1b1   :  { %1047 = vmatpush1.bf16.msra.mxu0 %v3006_v35  ;;  %1470 = vmatpush1.bf16.msra.mxu1 %v3078_v5  ;;  %v3847_v5 = vsub.s32 %v2393_v2, %v3812_v6  ;;  %v3104_v6 = vld [vmem:[#allocation11 + $0x154] ss:$12 sps:$4 sm:$0xff]  }
 0x1b2   :  { %1048 = vmatprep.subr.bf16.mxu0 %v3011_v36  ;;  %1471 = vmatprep.subr.bf16.mxu1 %v3083_v8 }
 0x1b5   :  { %1049 = vmatpush1.bf16.msra.mxu0 %v3009_v37  ;;  %1472 = vmatpush1.bf16.msra.mxu1 %v3081_v10  ;;  %v3059_v10 = vld [vmem:[#allocation10 + $0x174] ss:$8 sps:$4 sm:$0xff]  }
 0x1b6   :  { %1050 = vmatprep.subr.bf16.mxu0 %v3014_v38  ;;  %1473 = vmatprep.subr.bf16.mxu1 %v3086_v11 }
 0x1b9   :  { %1051 = vmatpush1.bf16.msra.mxu0 %v3012_v39  ;;  %1474 = vmatpush1.bf16.msra.mxu1 %v3084_v12 }
 0x1ba   :  { %1052 = vmatprep.subr.bf16.mxu0 %v3017_v40  ;;  %1475 = vmatprep.subr.bf16.mxu1 %v3089_v13 }
 0x1bd   :  { %1053 = vmatpush1.bf16.msra.mxu0 %v3015_v41  ;;  %1476 = vmatpush1.bf16.msra.mxu1 %v3087_v14  ;;  %v3057_v14 = vld [vmem:[#allocation10 + $0x170] ss:$8 sps:$4 sm:$0xff]  }
 0x1be   :  { %1054 = vmatprep.subr.bf16.mxu0 %v3020_v42  ;;  %1477 = vmatprep.subr.bf16.mxu1 %v3092_v15 }
 0x1c1   :  { %1055 = vmatpush1.bf16.msra.mxu0 %v3018_v43  ;;  %1478 = vmatpush1.bf16.msra.mxu1 %v3090_v16 }
 0x1c2   :  { %1056 = vmatprep.subr.bf16.mxu0 %v3023_v44  ;;  %1479 = vmatprep.subr.bf16.mxu1 %v3095_v17  ;;  %v3036_v44 = vld [vmem:[#allocation10 + $0x100] ss:$8 sps:$4 sm:$0xff]  }
 0x1c5   :  { %1057 = vmatpush1.bf16.msra.mxu0 %v3021_v45  ;;  %1480 = vmatpush1.bf16.msra.mxu1 %v3093_v18 }
 0x1c6   :  { %1058 = vmatprep.subr.bf16.mxu0 %v3026_v46  ;;  %1481 = vmatprep.subr.bf16.mxu1 %v3098_v19  ;;  %v3102_v19 = vld [vmem:[#allocation11 + $0x150] ss:$12 sps:$4 sm:$0xff]  }
 0x1c9   :  { %1059 = vmatpush1.bf16.msra.mxu0 %v3024_v47  ;;  %1482 = vmatpush1.bf16.msra.mxu1 %v3096_v20  ;;  %v3041_v47 = vld [vmem:[#allocation10 + $0x114] ss:$8 sps:$4 sm:$0xff]   ;;  %v3107_v20 = vld [vmem:[#allocation11 + $0x16c] ss:$12 sps:$4 sm:$0xff]  }
 0x1ca   :  { %1060 = vmatprep.subr.bf16.mxu0 %v3029_v48  ;;  %1483 = vmatprep.subr.bf16.mxu1 %v3101_v21  ;;  %v3039_v48 = vld [vmem:[#allocation10 + $0x110] ss:$8 sps:$4 sm:$0xff]   ;;  %v3105_v21 = vld [vmem:[#allocation11 + $0x168] ss:$12 sps:$4 sm:$0xff]  }
 0x1cd   :  { %1061 = vmatpush1.bf16.msra.mxu0 %v3027_v49  ;;  %1484 = vmatpush1.bf16.msra.mxu1 %v3099_v22  ;;  %v3044_v49 = vld [vmem:[#allocation10 + $0x124] ss:$8 sps:$4 sm:$0xff]   ;;  %v3108_v22 = vld [vmem:[#allocation11 + $0xc8] ss:$12 sps:$4 sm:$0xff]  }
 0x1ce   :  { %1062 = vmatprep.subr.bf16.mxu0 %v3032_v50  ;;  %v3042_v50 = vld [vmem:[#allocation10 + $0x120] ss:$8 sps:$4 sm:$0xff]   ;;  %1485 = vmatprep.subr.bf16.mxu1 %v3104_v6 }
 0x1cf   :  { %v3119_v6 = vld [vmem:[#allocation11 + $0x80] ss:$12 sps:$4 sm:$0xff]  }
 0x1d1   :  { %1063 = vmatpush1.bf16.msra.mxu0 %v3030_v51  ;;  %v3047_v51 = vld [vmem:[#allocation10 + $0x134] ss:$8 sps:$4 sm:$0xff]   ;;  %1486 = vmatpush1.bf16.msra.mxu1 %v3102_v19  ;;  %v3120_v19 = vld [vmem:[#allocation11 + $0x158] ss:$12 sps:$4 sm:$0xff]  }
 0x1d2   :  { %1064 = vmatprep.subr.bf16.mxu0 %v3035_v52  ;;  %1487 = vmatprep.subr.bf16.mxu1 %v3107_v20  ;;  %v3121_v20 = vld [vmem:[#allocation11 + $0x98] ss:$12 sps:$4 sm:$0xff]  }
 0x1d5   :  { %1065 = vmatpush1.bf16.msra.mxu0 %v3033_v53  ;;  %v3045_v53 = vld [vmem:[#allocation10 + $0x130] ss:$8 sps:$4 sm:$0xff]   ;;  %1488 = vmatpush1.bf16.msra.mxu1 %v3105_v21 }
 0x1d6   :  { %1075 = vmatprep.subr.bf16.mxu0 %v3038_v54  ;;  %2826 = vmatprep.subr.bf16.mxu1 %v3108_v22  ;;  %v3122_v21 = vld [vmem:[#allocation11 + $0x170] ss:$12 sps:$4 sm:$0xff]  }
 0x1d7   :  { %v3123_v22 = vld [vmem:[#allocation11 + $0xb0] ss:$12 sps:$4 sm:$0xff]  }
 0x26b   :  { %v683_v28 = vpop.f32.mrb[0].mxu1  ;;  %v2820_v29 = vpop.f32.mrb[4].mxu0 }
 0x26c   :  { %v684_v31 = vadd.f32 %v683_v28, %v381_v25  ;;  %v685_v32 = vpop.f32.mrb[1].mxu1  ;;  %v2821_v33 = vpop.f32.mrb[5].mxu0  ;;  %v3126_v25 = vld [vmem:[#allocation13 + $0x4] ss:$8 sps:$4 sm:$0xff]   ;;  %v3127_v28 = vld [vmem:[#allocation13 + $0x10] ss:$8 sps:$4 sm:$0xff]  }
 0x26d   :  { %v3831_v34 = vadd.f32 %v685_v32, %v385_v27  ;;  %v2822_v35 = vadd.f32 %v2821_v33, %v2820_v29  ;;  %v687_v36 = vpop.f32.mrb[2].mxu1  ;;  %v2823_v37 = vpop.f32.mrb[6].mxu0  ;;  %v3129_v27 = vld [vmem:[#allocation13 + $0x14] ss:$8 sps:$4 sm:$0xff]   ;;  %v3132_v29 = vld [vmem:[#allocation13 + $0x24] ss:$8 sps:$4 sm:$0xff]  }
 0x26e   :  { %v3834_v38 = vadd.f32 %v684_v31, %v3808_v26  ;;  %v688_v39 = vpop.f32.mrb[3].mxu1  ;;  %v2824_v40 = vpop.f32.mrb[7].mxu0  ;;  %v3135_v31 = vld [vmem:[#allocation13 + $0x34] ss:$8 sps:$4 sm:$0xff]   ;;  %v3133_v32 = vld [vmem:[#allocation13 + $0x30] ss:$8 sps:$4 sm:$0xff]  }
 0x26f   :  { %v2798_v41 = vmul.f32 -1.442695, %v3831_v34  ;;  %v3837_v42 = vadd.f32 %v2822_v35, %v389_v30  ;;  %v732_v43 = vpack.c.bf16 %v3831_v34, %v3831_v34  ;;  %v3130_v30 = vld [vmem:[#allocation13 + $0x20] ss:$8 sps:$4 sm:$0xff]   ;;  %v3138_v33 = vld [vmem:[#allocation13 + $0x44] ss:$8 sps:$4 sm:$0xff]  }
 0x270   :  { %v731_v45 = vpack.c.bf16 %v3834_v38, %v3834_v38  ;;  %v2797_v46 = vmul.f32 -1.442695, %v3834_v38  ;;  %v3136_v35 = vld [vmem:[#allocation13 + $0x40] ss:$8 sps:$4 sm:$0xff]   ;;  %v3141_v36 = vld [vmem:[#allocation13 + $0x54] ss:$8 sps:$4 sm:$0xff]  }
 0x271   :  { %3260 = vpow2.f32 %v2798_v41  ;;  %v2799_v26 = vmul.f32 -1.442695, %v3837_v42  ;;  %1066 = vmatprep.mubr.bf16.mxu0 %v732_v43  ;;  %v733_v18 = vpack.c.bf16 %v3837_v42, %v3837_v42  ;;  %v3139_v37 = vld [vmem:[#allocation13 + $0x50] ss:$8 sps:$4 sm:$0xff]   ;;  %v3144_v39 = vld [vmem:[#allocation13 + $0x64] ss:$8 sps:$4 sm:$0xff]  }
 0x272   :  { %3262 = vpow2.f32 %v2797_v46  ;;  %1067 = vmatmul.mubr.bf16.vlgmr.msra.gmra.mrb[8].mxu0 %v731_v45  ;;  %v3142_v40 = vld [vmem:[#allocation13 + $0x60] ss:$8 sps:$4 sm:$0xff]   ;;  %v3147_v41 = vld [vmem:[#allocation13 + $0x74] ss:$8 sps:$4 sm:$0xff]   ;;  %v3145_v43 = vld [vmem:[#allocation13 + $0x70] ss:$8 sps:$4 sm:$0xff]  }
 0x273   :  { %3264 = vpow2.f32 %v2799_v26  ;;  %1076 = vmatpush1.bf16.msra.mxu0 %v3036_v44  ;;  %1107 = vmatprep.mubr.bf16.mxu0 %v3588_v0  ;;  %v3150_v44 = vld [vmem:[#allocation13 + $0x84] ss:$8 sps:$4 sm:$0xff]   ;;  %v3148_v45 = vld [vmem:[#allocation13 + $0x80] ss:$8 sps:$4 sm:$0xff]   ;;  %v3153_v46 = vld [vmem:[#allocation13 + $0x94] ss:$8 sps:$4 sm:$0xff]  }
 0x274   :  { %1077 = vmatprep.subr.bf16.mxu0 %v3041_v47  ;;  %v3151_v47 = vld [vmem:[#allocation13 + $0x90] ss:$8 sps:$4 sm:$0xff]   ;;  %v3156_v26 = vld [vmem:[#allocation13 + $0xa4] ss:$8 sps:$4 sm:$0xff]  }
 0x277   :  { %1078 = vmatpush1.bf16.msra.mxu0 %v3039_v48  ;;  %v3154_v48 = vld [vmem:[#allocation13 + $0xa0] ss:$8 sps:$4 sm:$0xff]  }
 0x278   :  { %1079 = vmatprep.subr.bf16.mxu0 %v3044_v49  ;;  %v3159_v49 = vld [vmem:[#allocation13 + $0xb4] ss:$8 sps:$4 sm:$0xff]  }
 0x27b   :  { %v3261_v52 = vpop.eup %3260  ;;  %1080 = vmatpush1.bf16.msra.mxu0 %v3042_v50  ;;  %v3157_v50 = vld [vmem:[#allocation13 + $0xb0] ss:$8 sps:$4 sm:$0xff]  }
 0x27c   :  { %v3263_v54 = vpop.eup %3262  ;;  %v2379_v55 = vadd.f32 1.0, %v3261_v52  ;;  %1081 = vmatprep.subr.bf16.mxu0 %v3047_v51  ;;  %v3162_v51 = vld [vmem:[#allocation13 + $0xc4] ss:$8 sps:$4 sm:$0xff]   ;;  %v3160_v52 = vld [vmem:[#allocation13 + $0xc0] ss:$8 sps:$4 sm:$0xff]  }
 0x27d   :  { %v3265_v57 = vpop.eup %3264  ;;  %v2378_v58 = vadd.f32 1.0, %v3263_v54  ;;  %v3163_v54 = vld [vmem:[#allocation13 + $0xd0] ss:$8 sps:$4 sm:$0xff]  }
 0x27e   :  { %3266 = vrcp.f32 %v2379_v55  ;;  %v2380_v59 = vadd.f32 1.0, %v3265_v57  ;;  %v782_v55 = vld [vmem:[%s3955_s6] sm:$0x3] }
 0x27f   :  { %3268 = vrcp.f32 %v2378_v58  ;;  %1082 = vmatpush1.bf16.msra.mxu0 %v3045_v53  ;;  %v3165_v53 = vld [vmem:[#allocation13 + $0xd4] ss:$8 sps:$4 sm:$0xff]   ;;  %v791_v57 = vrot.slane %v782_v55, %v3818_v9 }
 0x280   :  { %3270 = vrcp.f32 %v2380_v59  ;;  %1083 = vmatprep.subr.bf16.mxu0 %v3050_v56  ;;  %v787_v56 = vrot.slane %v782_v55, %v3815_v7  ;;  %v3229_v55 = vld [vmem:[#allocation14 + $0x108] ss:$12 sps:$4 sm:$0xff]  }
 0x283   :  { %1084 = vmatpush1.bf16.msra.mxu0 %v3048_v60 }
 0x284   :  { %1085 = vmatprep.subr.bf16.mxu0 %v3053_v63 }
 0x287   :  { %1086 = vmatpush1.bf16.msra.mxu0 %v3051_v1 }
 0x288   :  { %v3267_v8 = vpop.eup %3266  ;;  %1087 = vmatprep.subr.bf16.mxu0 %v3056_v3 }
 0x289   :  { %v3269_v11 = vpop.eup %3268 }
 0x28a   :  { %v3271_v12 = vpop.eup %3270  ;;  %v2390_v13 = vcombine.low %v3269_v11, %v3267_v8  ;;  %v3111_v11 = vld [vmem:[#allocation11 + $0x20] ss:$12 sps:$4 sm:$0xff]  }
 0x28b   :  { %1088 = vmatpush1.bf16.msra.mxu0 %v3054_v4  ;;  %v2404_v15 = vrot.slane %v3271_v12, %v3847_v5  ;;  %v3109_v4 = vld [vmem:[#allocation11 + $0x8] ss:$12 sps:$4 sm:$0xff]   ;;  %v3112_v12 = vld [vmem:[#allocation11 + $0xf8] ss:$12 sps:$4 sm:$0xff]  }
 0x28c   :  { %1089 = vmatprep.subr.bf16.mxu0 %v3059_v10  ;;  %v2397_v16 = vrot.slane %v2390_v13, %v3847_v5  ;;  %v3110_v10 = vld [vmem:[#allocation11 + $0xe0] ss:$12 sps:$4 sm:$0xff]   ;;  %v3113_v13 = vld [vmem:[#allocation11 + $0x38] ss:$12 sps:$4 sm:$0xff]  }
 0x28e   :  { %v2405_v17 = vcombine.low %v2397_v16, %v2404_v15  ;;  %v3115_v15 = vld [vmem:[#allocation11 + $0x50] ss:$12 sps:$4 sm:$0xff]   ;;  %v3116_v16 = vld [vmem:[#allocation11 + $0x128] ss:$12 sps:$4 sm:$0xff]  }
 0x28f   :  { %1090 = vmatpush1.bf16.msra.mxu0 %v3057_v14  ;;  %v3114_v14 = vld [vmem:[#allocation11 + $0x110] ss:$12 sps:$4 sm:$0xff]  }
 0x290   :  { %2407 = vst [vmem:[#allocation16] sm:$0x3f] %v2405_v17  ;;  %1844 = vmatprep.subr.bf16.mxu0 %v3126_v25  ;;  %v3117_v17 = vld [vmem:[#allocation11 + $0x68] ss:$12 sps:$4 sm:$0xff]  }
 0x291   :  { %v3166_v25 = vld [vmem:[#allocation13 + $0xe0] ss:$8 sps:$4 sm:$0xff]  }
 0x292   :  { %1108 = vmatmul.mubr.bf16.vlgmr.msra.gmra.mrb[8].mxu0 %v733_v18  ;;  %v3118_v18 = vld [vmem:[#allocation11 + $0x140] ss:$12 sps:$4 sm:$0xff]  }
 0x293   :  { %1845 = vmatpush1.bf16.msra.mxu0 %v3124_v23  ;;  %v3168_v23 = vld [vmem:[#allocation13 + $0xe4] ss:$8 sps:$4 sm:$0xff]  }
 0x294   :  { %1846 = vmatprep.subr.bf16.mxu0 %v3129_v27  ;;  %v3171_v27 = vld [vmem:[#allocation13 + $0xf4] ss:$8 sps:$4 sm:$0xff]  }
 0x297   :  { %1847 = vmatpush1.bf16.msra.mxu0 %v3127_v28  ;;  %v3169_v28 = vld [vmem:[#allocation13 + $0xf0] ss:$8 sps:$4 sm:$0xff]  }
 0x298   :  { %1848 = vmatprep.subr.bf16.mxu0 %v3132_v29  ;;  %v3174_v29 = vld [vmem:[#allocation13 + $0x104] ss:$8 sps:$4 sm:$0xff]  }
 0x29b   :  { %1849 = vmatpush1.bf16.msra.mxu0 %v3130_v30  ;;  %v3196_v30 = vld [vmem:[#allocation14] ss:$12 sps:$4 sm:$0xff]  }
 0x29c   :  { %1850 = vmatprep.subr.bf16.mxu0 %v3135_v31  ;;  %v3198_v31 = vld [vmem:[#allocation14 + $0x4] ss:$12 sps:$4 sm:$0xff]  }
 0x29f   :  { %1851 = vmatpush1.bf16.msra.mxu0 %v3133_v32  ;;  %v3201_v32 = vld [vmem:[#allocation14 + $0x1c] ss:$12 sps:$4 sm:$0xff]  }
 0x2a0   :  { %1852 = vmatprep.subr.bf16.mxu0 %v3138_v33  ;;  %v3199_v33 = vld [vmem:[#allocation14 + $0x18] ss:$12 sps:$4 sm:$0xff]  }
 0x2a3   :  { %1853 = vmatpush1.bf16.msra.mxu0 %v3136_v35  ;;  %v3204_v35 = vld [vmem:[#allocation14 + $0x34] ss:$12 sps:$4 sm:$0xff]  }
 0x2a4   :  { %1854 = vmatprep.subr.bf16.mxu0 %v3141_v36  ;;  %v3202_v36 = vld [vmem:[#allocation14 + $0x30] ss:$12 sps:$4 sm:$0xff]  }
 0x2a7   :  { %1855 = vmatpush1.bf16.msra.mxu0 %v3139_v37  ;;  %v3207_v37 = vld [vmem:[#allocation14 + $0x4c] ss:$12 sps:$4 sm:$0xff]  }
 0x2a8   :  { %1856 = vmatprep.subr.bf16.mxu0 %v3144_v39  ;;  %v3205_v39 = vld [vmem:[#allocation14 + $0x48] ss:$12 sps:$4 sm:$0xff]  }
 0x2ab   :  { %1857 = vmatpush1.bf16.msra.mxu0 %v3142_v40  ;;  %v3210_v40 = vld [vmem:[#allocation14 + $0x64] ss:$12 sps:$4 sm:$0xff]  }
 0x2ac   :  { %1858 = vmatprep.subr.bf16.mxu0 %v3147_v41  ;;  %v3208_v41 = vld [vmem:[#allocation14 + $0x60] ss:$12 sps:$4 sm:$0xff]  }
 0x2af   :  { %1859 = vmatpush1.bf16.msra.mxu0 %v3145_v43  ;;  %v3213_v43 = vld [vmem:[#allocation14 + $0x7c] ss:$12 sps:$4 sm:$0xff]  }
 0x2b0   :  { %1860 = vmatprep.subr.bf16.mxu0 %v3150_v44  ;;  %v3211_v44 = vld [vmem:[#allocation14 + $0x78] ss:$12 sps:$4 sm:$0xff]  }
 0x2b3   :  { %1861 = vmatpush1.bf16.msra.mxu0 %v3148_v45  ;;  %v3216_v45 = vld [vmem:[#allocation14 + $0x94] ss:$12 sps:$4 sm:$0xff]  }
 0x2b4   :  { %1862 = vmatprep.subr.bf16.mxu0 %v3153_v46  ;;  %v3214_v46 = vld [vmem:[#allocation14 + $0x90] ss:$12 sps:$4 sm:$0xff]  }
 0x2b7   :  { %1863 = vmatpush1.bf16.msra.mxu0 %v3151_v47  ;;  %v3219_v47 = vld [vmem:[#allocation14 + $0xac] ss:$12 sps:$4 sm:$0xff]  }
 0x2b8   :  { %1864 = vmatprep.subr.bf16.mxu0 %v3156_v26  ;;  %v3217_v26 = vld [vmem:[#allocation14 + $0xa8] ss:$12 sps:$4 sm:$0xff]  }
 0x2bb   :  { %1865 = vmatpush1.bf16.msra.mxu0 %v3154_v48  ;;  %v3222_v48 = vld [vmem:[#allocation14 + $0xc4] ss:$12 sps:$4 sm:$0xff]  }
 0x2bc   :  { %1866 = vmatprep.subr.bf16.mxu0 %v3159_v49  ;;  %v3220_v49 = vld [vmem:[#allocation14 + $0xc0] ss:$12 sps:$4 sm:$0xff]  }
 0x2bf   :  { %1867 = vmatpush1.bf16.msra.mxu0 %v3157_v50  ;;  %v3225_v50 = vld [vmem:[#allocation14 + $0xdc] ss:$12 sps:$4 sm:$0xff]  }
 0x2c0   :  { %1868 = vmatprep.subr.bf16.mxu0 %v3162_v51  ;;  %v3223_v51 = vld [vmem:[#allocation14 + $0xd8] ss:$12 sps:$4 sm:$0xff]  }
 0x2c3   :  { %1869 = vmatpush1.bf16.msra.mxu0 %v3160_v52  ;;  %v3228_v52 = vld [vmem:[#allocation14 + $0xf4] ss:$12 sps:$4 sm:$0xff]  }
 0x2c4   :  { %1870 = vmatprep.subr.bf16.mxu0 %v3165_v53  ;;  %v3226_v53 = vld [vmem:[#allocation14 + $0xf0] ss:$12 sps:$4 sm:$0xff]  }
 0x2c7   :  { %1871 = vmatpush1.bf16.msra.mxu0 %v3163_v54  ;;  %v3231_v54 = vld [vmem:[#allocation14 + $0x10c] ss:$12 sps:$4 sm:$0xff]  }
 0x2c8   :  { %1872 = vmatprep.subr.bf16.mxu0 %v3168_v23 }
 0x2cb   :  { %1873 = vmatpush1.bf16.msra.mxu0 %v3166_v25  ;;  %v3190_v25 = vld [vmem:[#allocation13 + $0x160] ss:$8 sps:$4 sm:$0xff]  }
 0x2cc   :  { %1874 = vmatprep.subr.bf16.mxu0 %v3171_v27  ;;  %v3195_v27 = vld [vmem:[#allocation13 + $0x174] ss:$8 sps:$4 sm:$0xff]  }
 0x2cf   :  { %1875 = vmatpush1.bf16.msra.mxu0 %v3169_v28 }
 0x2d0   :  { %1885 = vmatprep.subr.bf16.mxu0 %v3174_v29 }
 0x365   :  { %v1109_v58 = vpop.f32.mrb[8].mxu0 }
 0x366   :  { %v2870_v59 = vadd.f32 %v1109_v58, %v787_v56  ;;  %v1111_v60 = vpop.f32.mrb[9].mxu0  ;;  %v3234_v56 = vld [vmem:[#allocation14 + $0x124] ss:$12 sps:$4 sm:$0xff]   ;;  %v3237_v58 = vld [vmem:[#allocation14 + $0x13c] ss:$12 sps:$4 sm:$0xff]  }
 0x367   :  { %v2871_v61 = vadd.f32 %v1111_v60, %v791_v57  ;;  %v1113_v62 = vpop.f32.mrb[10].mxu0  ;;  %v3232_v57 = vld [vmem:[#allocation14 + $0x120] ss:$12 sps:$4 sm:$0xff]   ;;  %v1184_v60 = vld [vmem:[%s3957_s8] sm:$0x7] }
 0x368   :  { %v1116_v63 = vmax.f32 %v2870_v59, 0.0  ;;  %v1114_v1 = vpop.f32.mrb[11].mxu0  ;;  %v3235_v59 = vld [vmem:[#allocation14 + $0x138] ss:$12 sps:$4 sm:$0xff]   ;;  %v1193_v62 = vrot.slane %v1184_v60, %v3818_v9  ;;  %v1197_v29 = vrot.slane %v1184_v60, %v3826_v24 }
 0x369   :  { %v1117_v2 = vmax.f32 %v2871_v61, 0.0  ;;  %v1189_v61 = vrot.slane %v1184_v60, %v3815_v7 }
 0x36a   :  { %v1118_v8 = vpack.c.bf16 %v1116_v63, %v1116_v63 }
 0x36b   :  { %v1119_v3 = vpack.c.bf16 %v1117_v2, %v1117_v2 }
 0x36d   :  { %1489 = vmatprep.mubr.bf16.mxu1 %v1119_v3 }
 0x36e   :  { %1490 = vmatmul.mubr.bf16.vlgmr.msra.gmra.mrb[4].mxu1 %v1118_v8 }
 0x36f   :  { %2827 = vmatpush3.bf16.msra.mxu1 %v3109_v4  ;;  %1530 = vmatprep.mubr.bf16.mxu1 %v1119_v3 }
 0x370   :  { %2828 = vmatprep.subr.bf16.mxu1 %v3110_v10 }
 0x373   :  { %2829 = vmatpush3.bf16.msra.mxu1 %v3111_v11 }
 0x374   :  { %2830 = vmatprep.subr.bf16.mxu1 %v3112_v12 }
 0x377   :  { %2831 = vmatpush3.bf16.msra.mxu1 %v3113_v13  ;;  %v3172_v13 = vld [vmem:[#allocation13 + $0x100] ss:$8 sps:$4 sm:$0xff]  }
 0x378   :  { %2832 = vmatprep.subr.bf16.mxu1 %v3114_v14 }
 0x37b   :  { %2833 = vmatpush3.bf16.msra.mxu1 %v3115_v15  ;;  %v3177_v15 = vld [vmem:[#allocation13 + $0x114] ss:$8 sps:$4 sm:$0xff]  }
 0x37c   :  { %2834 = vmatprep.subr.bf16.mxu1 %v3116_v16  ;;  %v3175_v16 = vld [vmem:[#allocation13 + $0x110] ss:$8 sps:$4 sm:$0xff]  }
 0x37f   :  { %2835 = vmatpush3.bf16.msra.mxu1 %v3117_v17  ;;  %v3178_v17 = vld [vmem:[#allocation13 + $0x120] ss:$8 sps:$4 sm:$0xff]  }
 0x380   :  { %2836 = vmatprep.subr.bf16.mxu1 %v3118_v18  ;;  %v3181_v18 = vld [vmem:[#allocation13 + $0x130] ss:$8 sps:$4 sm:$0xff]  }
 0x383   :  { %2837 = vmatpush3.bf16.msra.mxu1 %v3119_v6  ;;  %v3186_v6 = vld [vmem:[#allocation13 + $0x144] ss:$8 sps:$4 sm:$0xff]  }
 0x384   :  { %2838 = vmatprep.subr.bf16.mxu1 %v3120_v19  ;;  %v3184_v19 = vld [vmem:[#allocation13 + $0x140] ss:$8 sps:$4 sm:$0xff]  }
 0x387   :  { %2839 = vmatpush3.bf16.msra.mxu1 %v3121_v20  ;;  %v3189_v20 = vld [vmem:[#allocation13 + $0x154] ss:$8 sps:$4 sm:$0xff]  }
 0x388   :  { %2840 = vmatprep.subr.bf16.mxu1 %v3122_v21  ;;  %v3187_v21 = vld [vmem:[#allocation13 + $0x150] ss:$8 sps:$4 sm:$0xff]  }
 0x38b   :  { %2841 = vmatpush3.bf16.msra.mxu1 %v3123_v22 }
 0x38c   :  { %2267 = vmatprep.subr.bf16.mxu1 %v3198_v31 }
 0x38e   :  { %1531 = vmatmul.mubr.bf16.vlgmr.msra.gmra.mrb[8].mxu1 %v1118_v8 }
 0x38f   :  { %2268 = vmatpush1.bf16.msra.mxu1 %v3196_v30 }
 0x390   :  { %2269 = vmatprep.subr.bf16.mxu1 %v3201_v32 }
 0x393   :  { %2270 = vmatpush1.bf16.msra.mxu1 %v3199_v33  ;;  %v3193_v33 = vld [vmem:[#allocation13 + $0x170] ss:$8 sps:$4 sm:$0xff]  }
 0x394   :  { %2271 = vmatprep.subr.bf16.mxu1 %v3204_v35 }
 0x397   :  { %2272 = vmatpush1.bf16.msra.mxu1 %v3202_v36 }
 0x398   :  { %2273 = vmatprep.subr.bf16.mxu1 %v3207_v37 }
 0x39b   :  { %2274 = vmatpush1.bf16.msra.mxu1 %v3205_v39 }
 0x39c   :  { %2275 = vmatprep.subr.bf16.mxu1 %v3210_v40 }
 0x39f   :  { %2276 = vmatpush1.bf16.msra.mxu1 %v3208_v41 }
 0x3a0   :  { %2277 = vmatprep.subr.bf16.mxu1 %v3213_v43 }
 0x3a3   :  { %2278 = vmatpush1.bf16.msra.mxu1 %v3211_v44 }
 0x3a4   :  { %2279 = vmatprep.subr.bf16.mxu1 %v3216_v45 }
 0x3a7   :  { %2280 = vmatpush1.bf16.msra.mxu1 %v3214_v46 }
 0x3a8   :  { %2281 = vmatprep.subr.bf16.mxu1 %v3219_v47 }
 0x3ab   :  { %2282 = vmatpush1.bf16.msra.mxu1 %v3217_v26 }
 0x3ac   :  { %2283 = vmatprep.subr.bf16.mxu1 %v3222_v48 }
 0x3af   :  { %2284 = vmatpush1.bf16.msra.mxu1 %v3220_v49 }
 0x3b0   :  { %2285 = vmatprep.subr.bf16.mxu1 %v3225_v50 }
 0x3b3   :  { %2286 = vmatpush1.bf16.msra.mxu1 %v3223_v51 }
 0x3b4   :  { %2287 = vmatprep.subr.bf16.mxu1 %v3228_v52 }
 0x3b7   :  { %2288 = vmatpush1.bf16.msra.mxu1 %v3226_v53  ;;  %v3240_v53 = vld [vmem:[#allocation14 + $0x154] ss:$12 sps:$4 sm:$0xff]  }
 0x3b8   :  { %2289 = vmatprep.subr.bf16.mxu1 %v3231_v54  ;;  %v3238_v54 = vld [vmem:[#allocation14 + $0x150] ss:$12 sps:$4 sm:$0xff]  }
 0x3bb   :  { %2290 = vmatpush1.bf16.msra.mxu1 %v3229_v55  ;;  %v3243_v55 = vld [vmem:[#allocation14 + $0x16c] ss:$12 sps:$4 sm:$0xff]  }
 0x3bc   :  { %2291 = vmatprep.subr.bf16.mxu1 %v3234_v56  ;;  %v3241_v56 = vld [vmem:[#allocation14 + $0x168] ss:$12 sps:$4 sm:$0xff]  }
 0x3bf   :  { %2292 = vmatpush1.bf16.msra.mxu1 %v3232_v57  ;;  %v3244_v57 = vld [vmem:[#allocation14 + $0xc8] ss:$12 sps:$4 sm:$0xff]  }
 0x3c0   :  { %2293 = vmatprep.subr.bf16.mxu1 %v3237_v58  ;;  %v1592_v58 = vld [vmem:[%s3959_s10] sm:$0x3]  ;;  %s3590_s10 = smov [#allocation17]  }
 0x3c1   :  { %v1601_v60 = vrot.slane %v1592_v58, %v3818_v9  ;;  %s2494_s29 = sshll.u32 %s3590_s10, 4  ;;  %s2495_s29 = int_to_ptr.vmem [resolvable:$true] %s2494_s29 }
 0x3c2   :  { %s3472_s17 = scalar_lea.vmem %s2495_s29, 96  ;;  %p3477_p9 = scmp.lt.s32.totalorder %s2495_s29, %s2495_s29 }
 0x3c3   :  { %2294 = vmatpush1.bf16.msra.mxu1 %v3235_v59  ;;  %v1597_v59 = vrot.slane %v1592_v58, %v3815_v7  ;;  %p3473_p8 = scmp.ne.s32.totalorder %s2495_s29, %s3472_s17  ;;  %p3478_p10 = scmp.lt.s32.totalorder %s3472_s17, %s3472_s17 }
 0x3c4   :  { %2295 = vmatprep.subr.bf16.mxu1 %v3240_v53 }
 0x3c5   :  { %p3479_p11 = por %p3478_p10, %p3477_p9 }
 0x3c7   :  { %2296 = vmatpush1.bf16.msra.mxu1 %v3238_v54  ;;  %p3480_p12 = pnand %p3479_p11, %p3473_p8 }
 0x3c8   :  { %2297 = vmatprep.subr.bf16.mxu1 %v3243_v55 }
 0x3cb   :  { %2298 = vmatpush1.bf16.msra.mxu1 %v3241_v56 }
 0x3cc   :  { %2848 = vmatprep.subr.bf16.mxu1 %v3244_v57 }
 0x441   :  { %v1491_v63 = vpop.f32.mrb[4].mxu1 }
 0x442   :  { %v1492_v1 = vadd.f32 %v1491_v63, %v1189_v61  ;;  %v1493_v2 = vpop.f32.mrb[5].mxu1 }
 0x443   :  { %v1494_v3 = vadd.f32 %v1493_v2, %v1193_v62  ;;  %v1495_v4 = vpop.f32.mrb[6].mxu1 }
 0x444   :  { %v3864_v8 = vadd.f32 %v1492_v1, %v3834_v38  ;;  %v1496_v10 = vpop.f32.mrb[7].mxu1  ;;  %v3180_v38 = vld [vmem:[#allocation13 + $0x124] ss:$8 sps:$4 sm:$0xff]  }
 0x445   :  { %v3867_v11 = vadd.f32 %v1494_v3, %v3831_v34  ;;  %v3183_v34 = vld [vmem:[#allocation13 + $0x134] ss:$8 sps:$4 sm:$0xff]  }
 0x446   :  { %v1541_v14 = vpack.c.bf16 %v3864_v8, %v3864_v8  ;;  %v2800_v22 = vmul.f32 -1.442695, %v3864_v8 }
 0x447   :  { %v1542_v12 = vpack.c.bf16 %v3867_v11, %v3867_v11  ;;  %v2801_v23 = vmul.f32 -1.442695, %v3867_v11 }
 0x448   :  { %3272 = vpow2.f32 %v2800_v22  ;;  %v3256_v22 = vld [vmem:[#allocation14 + $0x158] ss:$12 sps:$4 sm:$0xff]  }
 0x449   :  { %1876 = vmatprep.mubr.bf16.mxu0 %v1542_v12  ;;  %3274 = vpow2.f32 %v2801_v23  ;;  %v3258_v23 = vld [vmem:[#allocation14 + $0x170] ss:$12 sps:$4 sm:$0xff]  }
 0x44a   :  { %1877 = vmatmul.mubr.bf16.vlgmr.msra.gmra.mrb[12].mxu0 %v1541_v14 }
 0x44b   :  { %1886 = vmatpush1.bf16.msra.mxu0 %v3172_v13  ;;  %1917 = vmatprep.mubr.bf16.mxu0 %v3588_v0  ;;  %v3192_v0 = vld [vmem:[#allocation13 + $0x164] ss:$8 sps:$4 sm:$0xff]   ;;  %v3245_v13 = vld [vmem:[#allocation14 + $0x8] ss:$12 sps:$4 sm:$0xff]  }
 0x44c   :  { %1887 = vmatprep.subr.bf16.mxu0 %v3177_v15  ;;  %v3246_v15 = vld [vmem:[#allocation14 + $0xe0] ss:$12 sps:$4 sm:$0xff]  }
 0x44f   :  { %1888 = vmatpush1.bf16.msra.mxu0 %v3175_v16  ;;  %v3247_v16 = vld [vmem:[#allocation14 + $0x20] ss:$12 sps:$4 sm:$0xff]  }
 0x450   :  { %1889 = vmatprep.subr.bf16.mxu0 %v3180_v38  ;;  %v3248_v38 = vld [vmem:[#allocation14 + $0xf8] ss:$12 sps:$4 sm:$0xff]  }
 0x452   :  { %v3273_v41 = vpop.eup %3272 }
 0x453   :  { %1890 = vmatpush1.bf16.msra.mxu0 %v3178_v17  ;;  %v3275_v43 = vpop.eup %3274  ;;  %v2417_v44 = vadd.f32 1.0, %v3273_v41  ;;  %v3249_v17 = vld [vmem:[#allocation14 + $0x38] ss:$12 sps:$4 sm:$0xff]  }
 0x454   :  { %1891 = vmatprep.subr.bf16.mxu0 %v3183_v34  ;;  %v2418_v45 = vadd.f32 1.0, %v3275_v43  ;;  %v3250_v34 = vld [vmem:[#allocation14 + $0x110] ss:$12 sps:$4 sm:$0xff]  }
 0x457   :  { %1892 = vmatpush1.bf16.msra.mxu0 %v3181_v18  ;;  %v3251_v18 = vld [vmem:[#allocation14 + $0x50] ss:$12 sps:$4 sm:$0xff]  }
 0x458   :  { %1893 = vmatprep.subr.bf16.mxu0 %v3186_v6  ;;  %v3252_v6 = vld [vmem:[#allocation14 + $0x128] ss:$12 sps:$4 sm:$0xff]  }
 0x45b   :  { %1894 = vmatpush1.bf16.msra.mxu0 %v3184_v19  ;;  %v3253_v19 = vld [vmem:[#allocation14 + $0x68] ss:$12 sps:$4 sm:$0xff]  }
 0x45c   :  { %1895 = vmatprep.subr.bf16.mxu0 %v3189_v20  ;;  %v3254_v20 = vld [vmem:[#allocation14 + $0x140] ss:$12 sps:$4 sm:$0xff]  }
 0x45f   :  { %1896 = vmatpush1.bf16.msra.mxu0 %v3187_v21  ;;  %v3255_v21 = vld [vmem:[#allocation14 + $0x80] ss:$12 sps:$4 sm:$0xff]  }
 0x460   :  { %1897 = vmatprep.subr.bf16.mxu0 %v3192_v0  ;;  %v3257_v0 = vld [vmem:[#allocation14 + $0x98] ss:$12 sps:$4 sm:$0xff]  }
 0x461   :  { %v2842_v28 = vpop.f32.mrb[8].mxu1 }
 0x462   :  { %v2843_v30 = vpop.f32.mrb[9].mxu1 }
 0x463   :  { %v2844_v31 = vadd.f32 %v2843_v30, %v2842_v28  ;;  %v2845_v32 = vpop.f32.mrb[10].mxu1  ;;  %1898 = vmatpush1.bf16.msra.mxu0 %v3190_v25  ;;  %v3259_v25 = vld [vmem:[#allocation14 + $0xb0] ss:$12 sps:$4 sm:$0xff]  }
 0x464   :  { %v2846_v35 = vpop.f32.mrb[11].mxu1  ;;  %1899 = vmatprep.subr.bf16.mxu0 %v3195_v27 }
 0x465   :  { %v1533_v36 = vadd.f32 %v2844_v31, %v1197_v29 }
 0x467   :  { %v3878_v37 = vadd.f32 %v1533_v36, %v3837_v42  ;;  %1900 = vmatpush1.bf16.msra.mxu0 %v3193_v33 }
 0x469   :  { %v2802_v39 = vmul.f32 -1.442695, %v3878_v37  ;;  %v1543_v40 = vpack.c.bf16 %v3878_v37, %v3878_v37 }
 0x46b   :  { %3276 = vpow2.f32 %v2802_v39  ;;  %1918 = vmatmul.mubr.bf16.vlgmr.msra.gmra.mrb[12].mxu0 %v1543_v40 }
 0x46c   :  { %3278 = vrcp.f32 %v2417_v44 }
 0x46d   :  { %3280 = vrcp.f32 %v2418_v45 }
 0x475   :  { %v3277_v46 = vpop.eup %3276 }
 0x476   :  { %v2419_v47 = vadd.f32 1.0, %v3277_v46  ;;  %v3279_v26 = vpop.eup %3278 }
 0x477   :  { %v3281_v42 = vpop.eup %3280 }
 0x478   :  { %3282 = vrcp.f32 %v2419_v47  ;;  %v2429_v48 = vcombine.low %v3279_v26, %v3281_v42 }
 0x47a   :  { %v2436_v50 = vrot.slane %v2429_v48, %v3847_v5 }
 0x482   :  { %v3283_v49 = vpop.eup %3282 }
 0x483   :  { %v2443_v51 = vrot.slane %v3283_v49, %v3847_v5 }
 0x485   :  { %v2444_v52 = vcombine.low %v2436_v50, %v2443_v51 }
 0x487   :  { %2446 = vst [vmem:[#allocation17] sm:$0x3f] %v2444_v52 }
 0x53e   :  { %v1919_v61 = vpop.f32.mrb[12].mxu0 }
 0x53f   :  { %v2872_v62 = vadd.f32 %v1919_v61, %v1597_v59  ;;  %v1921_v63 = vpop.f32.mrb[13].mxu0 }
 0x540   :  { %v2873_v1 = vadd.f32 %v1921_v63, %v1601_v60  ;;  %v1923_v2 = vpop.f32.mrb[14].mxu0 }
 0x541   :  { %v1926_v3 = vmax.f32 %v2872_v62, 0.0  ;;  %v1924_v4 = vpop.f32.mrb[15].mxu0 }
 0x542   :  { %v1927_v10 = vmax.f32 %v2873_v1, 0.0 }
 0x543   :  { %v1928_v14 = vpack.c.bf16 %v1926_v3, %v1926_v3 }
 0x544   :  { %v1929_v12 = vpack.c.bf16 %v1927_v10, %v1927_v10 }
 0x546   :  { %2299 = vmatprep.mubr.bf16.mxu1 %v1929_v12 }
 0x547   :  { %2300 = vmatmul.mubr.bf16.vlgmr.msra.gmra.mrb[12].mxu1 %v1928_v14 }
 0x548   :  { %2849 = vmatpush3.bf16.msra.mxu1 %v3245_v13  ;;  %2340 = vmatprep.mubr.bf16.mxu1 %v1929_v12 }
 0x549   :  { %2850 = vmatprep.subr.bf16.mxu1 %v3246_v15 }
 0x54c   :  { %2851 = vmatpush3.bf16.msra.mxu1 %v3247_v16 }
 0x54d   :  { %2852 = vmatprep.subr.bf16.mxu1 %v3248_v38 }
 0x550   :  { %2853 = vmatpush3.bf16.msra.mxu1 %v3249_v17 }
 0x551   :  { %2854 = vmatprep.subr.bf16.mxu1 %v3250_v34 }
 0x554   :  { %2855 = vmatpush3.bf16.msra.mxu1 %v3251_v18 }
 0x555   :  { %2856 = vmatprep.subr.bf16.mxu1 %v3252_v6 }
 0x558   :  { %2857 = vmatpush3.bf16.msra.mxu1 %v3253_v19 }
 0x559   :  { %2858 = vmatprep.subr.bf16.mxu1 %v3254_v20 }
 0x55c   :  { %2859 = vmatpush3.bf16.msra.mxu1 %v3255_v21 }
 0x55d   :  { %2860 = vmatprep.subr.bf16.mxu1 %v3256_v22 }
 0x560   :  { %2861 = vmatpush3.bf16.msra.mxu1 %v3257_v0 }
 0x561   :  { %2862 = vmatprep.subr.bf16.mxu1 %v3258_v23 }
 0x564   :  { %2863 = vmatpush3.bf16.msra.mxu1 %v3259_v25 }
 0x567   :  { %2341 = vmatmul.mubr.bf16.vlgmr.msra.gmra.mrb[16].mxu1 %v1928_v14 }
 0x568   :  { %3483 = shalt.err (!%p3480_p12)
}
 0x569   :  { %s3484_s24 = scalar_lea.hbm %s3963_s14, 96 }
 0x56a   :  { %p3485_p13 = scmp.ne.s32.totalorder %s3963_s14, %s3484_s24  ;;  %p3488_p0 = scmp.lt.u32.totalorder %s3484_s24, %s3963_s14 }
 0x56c   :  { %p3490_p1 = pnand %p3488_p0, %p3485_p13 }
 0x56e   :  { %3493 = shalt.err (!%p3490_p1)
}
 0x56f   :  { %2497 = dma.vmem_to_hbm [thread:$0]  %s2495_s29, 96, %s3963_s14, [#allocation18]  }
 0x570   :  { %s3494_s30 = scalar_lea.vmem %s2485_s20, 96  ;;  %p3499_p3 = scmp.lt.s32.totalorder %s2485_s20, %s2485_s20 }
 0x571   :  { %p3495_p2 = scmp.ne.s32.totalorder %s2485_s20, %s3494_s30  ;;  %p3500_p4 = scmp.lt.s32.totalorder %s3494_s30, %s3494_s30 }
 0x573   :  { %p3501_p5 = por %p3500_p4, %p3499_p3 }
 0x575   :  { %p3502_p6 = pnand %p3501_p5, %p3495_p2 }
 0x577   :  { %3505 = shalt.err (!%p3502_p6)
}
 0x578   :  { %s3506_s2 = scalar_lea.hbm %s3962_s13, 96 }
 0x579   :  { %p3507_p7 = scmp.ne.s32.totalorder %s3962_s13, %s3506_s2  ;;  %p3510_p8 = scmp.lt.u32.totalorder %s3506_s2, %s3962_s13 }
 0x57b   :  { %p3512_p9 = pnand %p3510_p8, %p3507_p7 }
 0x57d   :  { %3515 = shalt.err (!%p3512_p9)
}
 0x57e   :  { %2487 = dma.vmem_to_hbm [thread:$0]  %s2485_s20, 96, %s3962_s13, [#allocation4]   ;;  %v1994_v27 = vld [vmem:[%s3961_s12] sm:$0x7] }
 0x57f   :  { %v1999_v28 = vrot.slane %v1994_v27, %v3815_v7  ;;  %v2003_v29 = vrot.slane %v1994_v27, %v3818_v9  ;;  %v2007_v42 = vrot.slane %v1994_v27, %v3826_v24  ;;  %s3592_s12 = smov [#allocation20]   ;;  %s3593_s25 = smov [#allocation19]  }
 0x580   :  { %s2514_s13 = sshll.u32 %s3592_s12, 4  ;;  %s2504_s10 = sshll.u32 %s3593_s25, 4  ;;  %s2515_s13 = int_to_ptr.vmem [resolvable:$true] %s2514_s13  ;;  %s2505_s10 = int_to_ptr.vmem [resolvable:$true] %s2504_s10 }
 0x581   :  { %s3516_s29 = scalar_lea.vmem %s2515_s13, 64  ;;  %p3521_p11 = scmp.lt.s32.totalorder %s2515_s13, %s2515_s13 }
 0x582   :  { %p3517_p10 = scmp.ne.s32.totalorder %s2515_s13, %s3516_s29  ;;  %p3522_p12 = scmp.lt.s32.totalorder %s3516_s29, %s3516_s29 }
 0x584   :  { %p3523_p13 = por %p3522_p12, %p3521_p11 }
 0x586   :  { %p3524_p0 = pnand %p3523_p13, %p3517_p10 }
 0x61a   :  { %v2301_v30 = vpop.f32.mrb[12].mxu1 }
 0x61b   :  { %v2302_v31 = vadd.f32 %v2301_v30, %v1999_v28  ;;  %v2303_v32 = vpop.f32.mrb[13].mxu1 }
 0x61c   :  { %v2304_v33 = vadd.f32 %v2303_v32, %v2003_v29  ;;  %v2305_v35 = vpop.f32.mrb[14].mxu1 }
 0x61d   :  { %v2348_v36 = vadd.f32 %v2302_v31, %v3864_v8  ;;  %v2306_v39 = vpop.f32.mrb[15].mxu1 }
 0x61e   :  { %v2349_v40 = vadd.f32 %v2304_v33, %v3867_v11 }
 0x61f   :  { %v2794_v41 = vmul.f32 -1.442695, %v2348_v36 }
 0x620   :  { %v2795_v43 = vmul.f32 -1.442695, %v2349_v40 }
 0x621   :  { %3284 = vpow2.f32 %v2794_v41 }
 0x622   :  { %3286 = vpow2.f32 %v2795_v43 }
 0x62b   :  { %v3285_v44 = vpop.eup %3284 }
 0x62c   :  { %v3287_v45 = vpop.eup %3286  ;;  %v2360_v46 = vadd.f32 1.0, %v3285_v44 }
 0x62d   :  { %v2361_v7 = vadd.f32 1.0, %v3287_v45 }
 0x62e   :  { %3288 = vrcp.f32 %v2360_v46 }
 0x62f   :  { %3290 = vrcp.f32 %v2361_v7 }
 0x638   :  { %v3289_v9 = vpop.eup %3288 }
 0x639   :  { %v3291_v47 = vpop.eup %3290 }
 0x63a   :  { %v2864_v26 = vpop.f32.mrb[16].mxu1  ;;  %v2450_v48 = vcombine.low %v3289_v9, %v3291_v47 }
 0x63b   :  { %v2865_v8 = vpop.f32.mrb[17].mxu1 }
 0x63c   :  { %v2866_v49 = vadd.f32 %v2865_v8, %v2864_v26  ;;  %v2867_v50 = vpop.f32.mrb[18].mxu1  ;;  %v2457_v24 = vrot.slane %v2450_v48, %v3847_v5 }
 0x63d   :  { %v2868_v11 = vpop.f32.mrb[19].mxu1 }
 0x63e   :  { %v2343_v51 = vadd.f32 %v2866_v49, %v2007_v42 }
 0x640   :  { %v2350_v52 = vadd.f32 %v2343_v51, %v3878_v37 }
 0x642   :  { %v2796_v53 = vmul.f32 -1.442695, %v2350_v52 }
 0x644   :  { %3292 = vpow2.f32 %v2796_v53 }
 0x64e   :  { %v3293_v54 = vpop.eup %3292 }
 0x64f   :  { %v2362_v55 = vadd.f32 1.0, %v3293_v54 }
 0x651   :  { %3294 = vrcp.f32 %v2362_v55 }
 0x65b   :  { %v3295_v56 = vpop.eup %3294 }
 0x65c   :  { %v2464_v57 = vrot.slane %v3295_v56, %v3847_v5  ;;  %v2468_v58 = vcombine.low %v3291_v47, %v3295_v56 }
 0x65e   :  { %v2465_v59 = vcombine.low %v2457_v24, %v2464_v57  ;;  %2803 = vst.sshfl [vmem:[#allocation20] sm:$0x33 pattern:$0x76325410] %v2468_v58 }
 0x65f   :  { %3527 = shalt.err (!%p3524_p0)
}
 0x660   :  { %s3528_s17 = scalar_lea.hbm %s3965_s16, 64 }
 0x661   :  { %p3529_p1 = scmp.ne.s32.totalorder %s3965_s16, %s3528_s17  ;;  %p3532_p2 = scmp.lt.u32.totalorder %s3528_s17, %s3965_s16 }
 0x663   :  { %p3534_p3 = pnand %p3532_p2, %p3529_p1 }
 0x665   :  { %3537 = shalt.err (!%p3534_p3)
}
 0x666   :  { %2517 = dma.vmem_to_hbm [thread:$0]  %s2515_s13, 64, %s3965_s16, [#allocation21]   ;;  %2467 = vst [vmem:[#allocation19] sm:$0x3f] %v2465_v59 }
 0x667   :  { %s3538_s0 = scalar_lea.vmem %s2505_s10, 96  ;;  %p3543_p5 = scmp.lt.s32.totalorder %s2505_s10, %s2505_s10 }
 0x668   :  { %p3539_p4 = scmp.ne.s32.totalorder %s2505_s10, %s3538_s0  ;;  %p3544_p6 = scmp.lt.s32.totalorder %s3538_s0, %s3538_s0 }
 0x66a   :  { %p3545_p7 = por %p3544_p6, %p3543_p5 }
 0x66c   :  { %p3546_p8 = pnand %p3545_p7, %p3539_p4 }
 0x66e   :  { %3549 = shalt.err (!%p3546_p8)
}
 0x66f   :  { %s3550_s30 = scalar_lea.hbm %s3964_s15, 96 }
 0x670   :  { %p3551_p9 = scmp.ne.s32.totalorder %s3964_s15, %s3550_s30  ;;  %p3554_p10 = scmp.lt.u32.totalorder %s3550_s30, %s3964_s15 }
 0x672   :  { %p3556_p11 = pnand %p3554_p10, %p3551_p9 }
 0x674   :  { %3559 = shalt.err (!%p3556_p11)
}
 0x675   :  { %2507 = dma.vmem_to_hbm [thread:$0]  %s2505_s10, 96, %s3964_s15, [#allocation18]  }
 0x676   :  { %3570 = dma.done.wait [#allocation4], 96  }
 0x677   :  { %3571 = vsyncadd [#allocation4], 4294967200 }
 0x678   :  { %3572 = dma.done.wait [#allocation18], 192  }
 0x679   :  { %3573 = vsyncadd [#allocation18], 4294967104 }
 0x67a   :  { %3574 = dma.done.wait [#allocation21], 64  }
 0x67b   :  { %3575 = vsyncadd [#allocation21], 4294967232 }
 0x67c   :  { %2530 = vsyncpa [#allocation3], 1 }
 0x67d   :  { %2531 = vsyncpa [#allocation6], 1 }
 0x67e   :  { %2532 = vsyncpa [#allocation9], 1 }
 0x67f   :  { %2533 = vsyncpa [#allocation12], 1 }
 0x680   :  { %2534 = vsyncpa [#allocation15], 1 }
 0x681   :  { %2535 = vsyncpa [#allocation4], 1 }
 0x682   :  { %2536 = vsyncpa [#allocation18], 1 }
 0x683   :  { %2537 = vsyncpa [#allocation21], 1 }

</bundles_post_ra>
